<compile_context>
chip_gen: v6e
topology: v6e:2x2x1
jax: 0.10.0
libtpu: 0.0.40
codegen_flags: <defaults>
</compile_context>

<pallas_src>
import jax
import jax.numpy as jnp
from jax import lax
from jax.experimental import pallas as pl
from jax.experimental.pallas import tpu as pltpu

EPS = 1e-5
LANE = 128
_FUSED_VMEM_BUDGET = 20 * 1024 * 1024     # conservative: fits v7x's 64 MiB VMEM

_STAGED_CPARAMS = pltpu.CompilerParams(
    dimension_semantics=("parallel",),    # split batch tiles across TCs
    vmem_limit_bytes=48 * 1024 * 1024,
)
_FUSED_CPARAMS = pltpu.CompilerParams(vmem_limit_bytes=48 * 1024 * 1024)


def _round_up(v, m):
    return (v + m - 1) // m * m


def _pad_axis(a, axis, target):
    pads = [(0, 0)] * a.ndim
    pads[axis] = (0, target - a.shape[axis])
    return jnp.pad(a, pads)


# ----------------------------- in-kernel helpers ------------------------------

def _conv_same(a, w2d, K, pad):
    """'same' 1D conv as a single im2col matmul.
    a: (nb, L, Cin) f32 activations; w2d: (K*Cin, Cout) bf16.
    Returns (nb*L, Cout) f32 (MXU, f32 accumulation)."""
    nb, L, Cin = a.shape
    if pad:
        z = jnp.zeros((nb, pad, Cin), a.dtype)
        a = jnp.concatenate([z, a, z], axis=1)            # zero halo, (nb, L+2p, Cin)
    patches = jnp.concatenate([a[:, k:k + L, :] for k in range(K)], axis=-1)
    patches = patches.reshape(nb * L, K * Cin).astype(jnp.bfloat16)
    return jnp.dot(patches, w2d, preferred_element_type=jnp.float32)


def _partial_stats(y):
    """Per-channel (sum, sum of squares) over rows of y: (rows, C) -> (2, C)."""
    s1 = jnp.sum(y, axis=0, keepdims=True)
    s2 = jnp.sum(y * y, axis=0, keepdims=True)
    return jnp.concatenate([s1, s2], axis=0)


# ------------------------------ fused (1-call) kernel ---------------------------

def fused_kernel(x_ref, w0_ref, w1_ref, w2_ref, ws_ref,
                 g0_ref, be0_ref, g1_ref, be1_ref, g2_ref, be2_ref,
                 gs_ref, bes_ref, out_ref):
    N, L, cin = x_ref.shape
    C = ws_ref.shape[1]
    k0 = w0_ref.shape[0] // cin
    k1 = w1_ref.shape[0] // C
    k2 = w2_ref.shape[0] // C
    inv_count = 1.0 / float(N * L)
    x = x_ref[...].astype(jnp.float32)

    def bn(y, g_ref, be_ref):
        mean = jnp.sum(y, axis=0, keepdims=True) * inv_count
        var = jnp.sum(y * y, axis=0, keepdims=True) * inv_count - mean * mean
        scale = lax.rsqrt(var + EPS) * g_ref[...]
        return y * scale + (be_ref[...] - mean * scale)

    h = _conv_same(x, w0_ref[...], k0, (k0 - 1) // 2)                     # (N*L, C)
    h = jnp.maximum(bn(h, g0_ref, be0_ref), 0.0)
    h = _conv_same(h.reshape(N, L, C), w1_ref[...], k1, (k1 - 1) // 2)
    h = jnp.maximum(bn(h, g1_ref, be1_ref), 0.0)
    h = _conv_same(h.reshape(N, L, C), w2_ref[...], k2, (k2 - 1) // 2)
    h = bn(h, g2_ref, be2_ref)

    s = jnp.dot(x.reshape(N * L, cin).astype(jnp.bfloat16), ws_ref[...],
                preferred_element_type=jnp.float32)
    s = bn(s, gs_ref, bes_ref)

    out_ref[...] = jnp.maximum(h + s, 0.0).reshape(N, L, C).astype(out_ref.dtype)


# ------------------------------ staged (tiled) kernels --------------------------

def front_kernel(x_ref, w0_ref, ws_ref, h0_ref, s_ref, st0_ref, sts_ref):
    """conv7(x) and shortcut conv1x1(x) (biases folded into BN), + partial stats."""
    nb, L, cin = x_ref.shape
    K = w0_ref.shape[0] // cin
    x = x_ref[...].astype(jnp.float32)

    h0 = _conv_same(x, w0_ref[...], K, (K - 1) // 2)                      # (nb*L, C)
    s = jnp.dot(x.reshape(nb * L, cin).astype(jnp.bfloat16), ws_ref[...],
                preferred_element_type=jnp.float32)                       # (nb*L, C)

    h0_ref[...] = h0.reshape(nb, L, -1).astype(h0_ref.dtype)
    s_ref[...] = s.reshape(nb, L, -1).astype(s_ref.dtype)
    st0_ref[...] = _partial_stats(h0)[None]
    sts_ref[...] = _partial_stats(s)[None]


def mid_kernel(scale_ref, offset_ref, h_ref, w_ref, o_ref, st_ref):
    """Fused BN-apply + ReLU of previous conv output, then next conv + stats."""
    nb, L, C = h_ref.shape
    K = w_ref.shape[0] // C
    h = h_ref[...].astype(jnp.float32).reshape(nb * L, C)
    a = jnp.maximum(h * scale_ref[...] + offset_ref[...], 0.0)            # fused BN
    y = _conv_same(a.reshape(nb, L, C), w_ref[...], K, (K - 1) // 2)
    o_ref[...] = y.reshape(nb, L, C).astype(o_ref.dtype)
    st_ref[...] = _partial_stats(y)[None]


def tail_kernel(sch_ref, ofh_ref, scs_ref, ofs_ref, h_ref, s_ref, out_ref):
    """ReLU(BN(main) + BN(shortcut))."""
    nb, L, C = h_ref.shape
    h = h_ref[...].astype(jnp.float32).reshape(nb * L, C)
    s = s_ref[...].astype(jnp.float32).reshape(nb * L, C)
    y = (h * sch_ref[...] + ofh_ref[...]) + (s * scs_ref[...] + ofs_ref[...])
    out_ref[...] = jnp.maximum(y, 0.0).reshape(nb, L, C).astype(out_ref.dtype)


# --------------------------------- wrapper -------------------------------------

def _scale_offset(partial_stats, g, be, count):
    """Fold training-mode BN (batch stats over (N, L)) into per-channel scale/offset."""
    tot = jnp.sum(partial_stats, axis=0)                  # (2, C) total sums
    mean = tot[0:1] / count
    var = tot[1:2] / count - mean * mean                  # biased variance
    scale = lax.rsqrt(var + EPS) * g
    offset = be - mean * scale
    return scale, offset


def _prep(x, p):
    N, L, cin = x.shape
    n_dim = p["w0"].shape[-1]
    cin_p, c_p = _round_up(cin, LANE), _round_up(n_dim, LANE)

    xb = _pad_axis(x, 2, cin_p).astype(jnp.float32)

    def conv_w(w, ci, co):
        K = w.shape[0]
        w = _pad_axis(_pad_axis(w, 1, ci), 2, co)
        return w.reshape(K * ci, co).astype(jnp.bfloat16)

    w0 = conv_w(p["w0"], cin_p, c_p)
    w1 = conv_w(p["w1"], c_p, c_p)
    w2 = conv_w(p["w2"], c_p, c_p)
    ws = _pad_axis(_pad_axis(p["ws"], 0, cin_p), 1, c_p).astype(jnp.bfloat16)
    bn = {k: _pad_axis(p[k], 1, c_p).astype(jnp.float32)
          for k in ("g0", "be0", "g1", "be1", "g2", "be2", "gs", "bes")}
    # conv biases b0/b1/b2/bs are NOT passed to the kernels: a per-channel bias
    # immediately followed by training-mode BatchNorm cancels exactly.
    return xb, (w0, w1, w2, ws), bn, (cin_p, c_p, n_dim)


def _fused_bytes(N, L, cin_p, c_p):
    rows = N * L
    acts = 4 * rows * (cin_p + 5 * c_p)                   # x + f32 intermediates
    patches = 4 * rows * max(7 * cin_p, 5 * c_p)          # largest im2col buffer
    weights = 2 * (7 * cin_p + 5 * c_p + 3 * c_p + cin_p) * c_p
    return 2 * (acts + patches) + weights                 # 2x slack for compiler temps


def block_standard(x, p, nb=1, force_staged=False):
    N, L, _ = x.shape
    xb, (w0, w1, w2, ws), bn, (cin_p, c_p, n_dim) = _prep(x, p)

    if (not force_staged) and _fused_bytes(N, L, cin_p, c_p) <= _FUSED_VMEM_BUDGET:
        # -------- fully fused single-kernel path (everything resident in VMEM) ----
        out = pl.pallas_call(
            fused_kernel,
            out_shape=jax.ShapeDtypeStruct((N, L, c_p), jnp.float32),
            compiler_params=_FUSED_CPARAMS,
        )(xb, w0, w1, w2, ws,
          bn["g0"], bn["be0"], bn["g1"], bn["be1"],
          bn["g2"], bn["be2"], bn["gs"], bn["bes"])
        return out[:, :, :n_dim]

    # ---------------------- staged, batch-tiled path -------------------------------
    assert N % nb == 0, "batch tile must divide N"
    assert L % 8 == 0, "keep L a multiple of 8 (sublane tiling)"
    n_t = N // nb
    count = float(N * L)

    act_spec = pl.BlockSpec((nb, L, c_p), lambda i: (i, 0, 0))
    st_spec = pl.BlockSpec((1, 2, c_p), lambda i: (i, 0, 0))
    vec_spec = pl.BlockSpec((1, c_p), lambda i: (0, 0))
    act_shape = jax.ShapeDtypeStruct((N, L, c_p), jnp.bfloat16)
    st_shape = jax.ShapeDtypeStruct((n_t, 2, c_p), jnp.float32)

    # stage 0: conv7 + shortcut conv1x1 (+ partial BN stats)
    h0, s, st0, sts = pl.pallas_call(
        front_kernel,
        out_shape=(act_shape, act_shape, st_shape, st_shape),
        grid=(n_t,),
        in_specs=[pl.BlockSpec((nb, L, cin_p), lambda i: (i, 0, 0)),
                  pl.BlockSpec(w0.shape, lambda i: (0, 0)),
                  pl.BlockSpec(ws.shape, lambda i: (0, 0))],
        out_specs=(act_spec, act_spec, st_spec, st_spec),
        compiler_params=_STAGED_CPARAMS,
    )(xb, w0, ws)
    sc0, of0 = _scale_offset(st0, bn["g0"], bn["be0"], count)
    scs, ofs = _scale_offset(sts, bn["gs"], bn["bes"], count)

    # stage 1: BN0 + ReLU + conv5 (+ stats)
    h1, st1 = pl.pallas_call(
        mid_kernel,
        out_shape=(act_shape, st_shape),
        grid=(n_t,),
        in_specs=[vec_spec, vec_spec, act_spec,
                  pl.BlockSpec(w1.shape, lambda i: (0, 0))],
        out_specs=(act_spec, st_spec),
        compiler_params=_STAGED_CPARAMS,
    )(sc0, of0, h0, w1)
    sc1, of1 = _scale_offset(st1, bn["g1"], bn["be1"], count)

    # stage 2: BN1 + ReLU + conv3 (+ stats)
    h2, st2 = pl.pallas_call(
        mid_kernel,
        out_shape=(act_shape, st_shape),
        grid=(n_t,),
        in_specs=[vec_spec, vec_spec, act_spec,
                  pl.BlockSpec(w2.shape, lambda i: (0, 0))],
        out_specs=(act_spec, st_shape and st_spec),
        compiler_params=_STAGED_CPARAMS,
    )(sc1, of1, h1, w2)
    sc2, of2 = _scale_offset(st2, bn["g2"], bn["be2"], count)

    # stage 3: BN2(main) + BNs(shortcut), add, ReLU
    out = pl.pallas_call(
        tail_kernel,
        out_shape=jax.ShapeDtypeStruct((N, L, c_p), jnp.float32),
        grid=(n_t,),
        in_specs=[vec_spec, vec_spec, vec_spec, vec_spec, act_spec, act_spec],
        out_specs=act_spec,
        compiler_params=_STAGED_CPARAMS,
    )(sc2, of2, scs, ofs, h2, s)

    return out[:, :, :n_dim]       # drop the lane-padding channels


# ----------------------------- params & reference ------------------------------

def init_params(key, in_dim, n_dim):
    ks = jax.random.split(key, 12)

    def rnd(k, shape, scale):
        return (scale * jax.random.normal(k, shape, jnp.float32)).astype(jnp.float32)

    p = {
        "w0": rnd(ks[0], (7, in_dim, n_dim), 0.2),
        "b0": rnd(ks[1], (1, n_dim), 0.1),
        "w1": rnd(ks[2], (5, n_dim, n_dim), 0.1),
        "b1": rnd(ks[3], (1, n_dim), 0.1),
        "w2": rnd(ks[4], (3, n_dim, n_dim), 0.1),
        "b2": rnd(ks[5], (1, n_dim), 0.1),
        "ws": rnd(ks[6], (in_dim, n_dim), 0.3),
        "bs": rnd(ks[7], (1, n_dim), 0.1),
    }
    for i, tag in enumerate(["0", "1", "2", "s"]):
        p["g" + tag] = (1.0 + 0.1 * jax.random.normal(ks[8 + i], (1, n_dim))).astype(jnp.float32)
        p["be" + tag] = rnd(jax.random.fold_in(ks[8 + i], 1), (1, n_dim), 0.05)
    return p


def reference(x, p):
    """Pure-JAX f32 reference (includes conv biases, which the kernel folds away)."""
    def conv(h, w, b, pad):
        K = w.shape[0]
        L = h.shape[1]
        hp = jnp.pad(h, ((0, 0), (pad, pad), (0, 0)))
        acc = jnp.zeros(h.shape[:2] + (w.shape[2],), jnp.float32)
        for k in range(K):
            acc = acc + jnp.einsum("nlc,cd->nld", hp[:, k:k + L, :], w[k])
        return acc + b[None]

    def bn(h, g, be):
        mean = jnp.mean(h, axis=(0, 1), keepdims=True)
        var = jnp.mean((h - mean) ** 2, axis=(0, 1), keepdims=True)
        return (h - mean) / jnp.sqrt(var + EPS) * g[None] + be[None]

    relu = lambda v: jnp.maximum(v, 0.0)
    h = relu(bn(conv(x, p["w0"], p["b0"], 3), p["g0"], p["be0"]))
    h = relu(bn(conv(h, p["w1"], p["b1"], 2), p["g1"], p["be1"]))
    h = bn(conv(h, p["w2"], p["b2"], 1), p["g2"], p["be2"])
    s = bn(jnp.einsum("nlc,cd->nld", x, p["ws"]) + p["bs"][None], p["gs"], p["bes"])
    return relu(h + s)


if __name__ == "__main__":
    key = jax.random.PRNGKey(0)
    kx, kp = jax.random.split(key)
    N, L, in_dim, n_dim = 2, 16, 4, 32          # torch input would be (2, 4, 16) NCL
    x = jax.random.normal(kx, (N, L, in_dim), jnp.float32)
    params = init_params(kp, in_dim, n_dim)
    ref = reference(x, params)
    ref_scale = float(jnp.max(jnp.abs(ref))) + 1e-6

    fused_fn = jax.jit(block_standard)
    staged_fn = jax.jit(lambda a, b: block_standard(a, b, force_staged=True))

    for name, fn in (("fused", fused_fn), ("staged", staged_fn)):
        out = jax.block_until_ready(fn(x, params))
        assert out.shape == (N, L, n_dim), (name, out.shape)
        err = float(jnp.max(jnp.abs(out - ref)))
        # bf16 matmul operands (+ bf16 intermediates on the staged path) vs f32 ref
        assert err <= 5e-2 * ref_scale, (
            f"{name} kernel/reference mismatch: max abs err {err} (ref max {ref_scale})")
    print("KERNEL_OK")
</pallas_src>

<mosaic_0001>
module attributes {stable_mosaic.version = 11 : i64} {
  func.func @fused_kernel(%arg0: memref<2x16x128xf32, #tpu.memory_space<vmem>>, %arg1: memref<896x128xbf16, #tpu.memory_space<vmem>>, %arg2: memref<640x128xbf16, #tpu.memory_space<vmem>>, %arg3: memref<384x128xbf16, #tpu.memory_space<vmem>>, %arg4: memref<128x128xbf16, #tpu.memory_space<vmem>>, %arg5: memref<1x128xf32, #tpu.memory_space<vmem>>, %arg6: memref<1x128xf32, #tpu.memory_space<vmem>>, %arg7: memref<1x128xf32, #tpu.memory_space<vmem>>, %arg8: memref<1x128xf32, #tpu.memory_space<vmem>>, %arg9: memref<1x128xf32, #tpu.memory_space<vmem>>, %arg10: memref<1x128xf32, #tpu.memory_space<vmem>>, %arg11: memref<1x128xf32, #tpu.memory_space<vmem>>, %arg12: memref<1x128xf32, #tpu.memory_space<vmem>>, %arg13: memref<2x16x128xf32, #tpu.memory_space<vmem>>) attributes {dimension_semantics = [], scalar_prefetch = 0 : i64, scratch_operands = 0 : i64, tpu.core_type = #tpu.core_type<tc>} {
    %c0 = arith.constant 0 : index
    %c0_0 = arith.constant 0 : index
    %c0_1 = arith.constant 0 : index
    %0 = vector.load %arg0[%c0, %c0_0, %c0_1] : memref<2x16x128xf32, #tpu.memory_space<vmem>>, vector<2x16x128xf32>
    %c0_2 = arith.constant 0 : index
    %c0_3 = arith.constant 0 : index
    %1 = vector.load %arg1[%c0_2, %c0_3] : memref<896x128xbf16, #tpu.memory_space<vmem>>, vector<896x128xbf16>
    %cst = arith.constant 0.000000e+00 : f32
    %2 = vector.broadcast %cst : f32 to vector<2x3x128xf32>
    %3 = tpu.concatenate %2, %0, %2 in 1 : vector<2x3x128xf32>, vector<2x16x128xf32>, vector<2x3x128xf32> -> vector<2x22x128xf32>
    %4 = vector.extract_strided_slice %3 {offsets = [0, 0, 0], sizes = [2, 16, 128], strides = [1, 1, 1]} : vector<2x22x128xf32> to vector<2x16x128xf32>
    %5 = vector.extract_strided_slice %3 {offsets = [0, 1, 0], sizes = [2, 16, 128], strides = [1, 1, 1]} : vector<2x22x128xf32> to vector<2x16x128xf32>
    %6 = vector.extract_strided_slice %3 {offsets = [0, 2, 0], sizes = [2, 16, 128], strides = [1, 1, 1]} : vector<2x22x128xf32> to vector<2x16x128xf32>
    %7 = vector.extract_strided_slice %3 {offsets = [0, 3, 0], sizes = [2, 16, 128], strides = [1, 1, 1]} : vector<2x22x128xf32> to vector<2x16x128xf32>
    %8 = vector.extract_strided_slice %3 {offsets = [0, 4, 0], sizes = [2, 16, 128], strides = [1, 1, 1]} : vector<2x22x128xf32> to vector<2x16x128xf32>
    %9 = vector.extract_strided_slice %3 {offsets = [0, 5, 0], sizes = [2, 16, 128], strides = [1, 1, 1]} : vector<2x22x128xf32> to vector<2x16x128xf32>
    %10 = vector.extract_strided_slice %3 {offsets = [0, 6, 0], sizes = [2, 16, 128], strides = [1, 1, 1]} : vector<2x22x128xf32> to vector<2x16x128xf32>
    %11 = tpu.concatenate %4, %5, %6, %7, %8, %9, %10 in 2 : vector<2x16x128xf32>, vector<2x16x128xf32>, vector<2x16x128xf32>, vector<2x16x128xf32>, vector<2x16x128xf32>, vector<2x16x128xf32>, vector<2x16x128xf32> -> vector<2x16x896xf32>
    %12 = vector.shape_cast %11 : vector<2x16x896xf32> to vector<32x896xf32>
    %13 = arith.truncf %12 : vector<32x896xf32> to vector<32x896xbf16>
    %cst_4 = arith.constant dense<0.000000e+00> : vector<32x128xf32>
    %14 = tpu.matmul %13, %1, %cst_4 {dimension_numbers = #tpu.dot_dimension_numbers<[1], [0], [0], [1], [0, 0, 1, 1], [], []>} : vector<32x896xbf16>, vector<896x128xbf16>, vector<32x128xf32> -> vector<32x128xf32>
    %cst_5 = arith.constant dense<0.000000e+00> : vector<128xf32>
    %15 = vector.multi_reduction <add>, %14, %cst_5 [0] : vector<32x128xf32> to vector<128xf32>
    %16 = vector.shape_cast %15 : vector<128xf32> to vector<1x128xf32>
    %cst_6 = arith.constant 3.125000e-02 : f32
    %17 = vector.broadcast %cst_6 : f32 to vector<1x128xf32>
    %18 = arith.mulf %16, %17 : vector<1x128xf32>
    %19 = arith.mulf %14, %14 : vector<32x128xf32>
    %cst_7 = arith.constant dense<0.000000e+00> : vector<128xf32>
    %20 = vector.multi_reduction <add>, %19, %cst_7 [0] : vector<32x128xf32> to vector<128xf32>
    %21 = vector.shape_cast %20 : vector<128xf32> to vector<1x128xf32>
    %cst_8 = arith.constant 3.125000e-02 : f32
    %22 = vector.broadcast %cst_8 : f32 to vector<1x128xf32>
    %23 = arith.mulf %21, %22 : vector<1x128xf32>
    %24 = arith.mulf %18, %18 : vector<1x128xf32>
    %25 = arith.subf %23, %24 : vector<1x128xf32>
    %cst_9 = arith.constant 9.99999974E-6 : f32
    %26 = vector.broadcast %cst_9 : f32 to vector<1x128xf32>
    %27 = arith.addf %25, %26 : vector<1x128xf32>
    %28 = math.rsqrt %27 : vector<1x128xf32>
    %c0_10 = arith.constant 0 : index
    %c0_11 = arith.constant 0 : index
    %29 = vector.load %arg5[%c0_10, %c0_11] : memref<1x128xf32, #tpu.memory_space<vmem>>, vector<1x128xf32>
    %30 = arith.mulf %28, %29 : vector<1x128xf32>
    %31 = vector.broadcast %30 : vector<1x128xf32> to vector<32x128xf32>
    %32 = arith.mulf %14, %31 : vector<32x128xf32>
    %c0_12 = arith.constant 0 : index
    %c0_13 = arith.constant 0 : index
    %33 = vector.load %arg6[%c0_12, %c0_13] : memref<1x128xf32, #tpu.memory_space<vmem>>, vector<1x128xf32>
    %34 = arith.mulf %18, %30 : vector<1x128xf32>
    %35 = arith.subf %33, %34 : vector<1x128xf32>
    %36 = vector.broadcast %35 : vector<1x128xf32> to vector<32x128xf32>
    %37 = arith.addf %32, %36 : vector<32x128xf32>
    %cst_14 = arith.constant 0.000000e+00 : f32
    %38 = vector.broadcast %cst_14 : f32 to vector<32x128xf32>
    %39 = arith.maximumf %37, %38 : vector<32x128xf32>
    %40 = vector.shape_cast %39 : vector<32x128xf32> to vector<2x16x128xf32>
    %c0_15 = arith.constant 0 : index
    %c0_16 = arith.constant 0 : index
    %41 = vector.load %arg2[%c0_15, %c0_16] : memref<640x128xbf16, #tpu.memory_space<vmem>>, vector<640x128xbf16>
    %cst_17 = arith.constant 0.000000e+00 : f32
    %42 = vector.broadcast %cst_17 : f32 to vector<2x2x128xf32>
    %43 = tpu.concatenate %42, %40, %42 in 1 : vector<2x2x128xf32>, vector<2x16x128xf32>, vector<2x2x128xf32> -> vector<2x20x128xf32>
    %44 = vector.extract_strided_slice %43 {offsets = [0, 0, 0], sizes = [2, 16, 128], strides = [1, 1, 1]} : vector<2x20x128xf32> to vector<2x16x128xf32>
    %45 = vector.extract_strided_slice %43 {offsets = [0, 1, 0], sizes = [2, 16, 128], strides = [1, 1, 1]} : vector<2x20x128xf32> to vector<2x16x128xf32>
    %46 = vector.extract_strided_slice %43 {offsets = [0, 2, 0], sizes = [2, 16, 128], strides = [1, 1, 1]} : vector<2x20x128xf32> to vector<2x16x128xf32>
    %47 = vector.extract_strided_slice %43 {offsets = [0, 3, 0], sizes = [2, 16, 128], strides = [1, 1, 1]} : vector<2x20x128xf32> to vector<2x16x128xf32>
    %48 = vector.extract_strided_slice %43 {offsets = [0, 4, 0], sizes = [2, 16, 128], strides = [1, 1, 1]} : vector<2x20x128xf32> to vector<2x16x128xf32>
    %49 = tpu.concatenate %44, %45, %46, %47, %48 in 2 : vector<2x16x128xf32>, vector<2x16x128xf32>, vector<2x16x128xf32>, vector<2x16x128xf32>, vector<2x16x128xf32> -> vector<2x16x640xf32>
    %50 = vector.shape_cast %49 : vector<2x16x640xf32> to vector<32x640xf32>
    %51 = arith.truncf %50 : vector<32x640xf32> to vector<32x640xbf16>
    %cst_18 = arith.constant dense<0.000000e+00> : vector<32x128xf32>
    %52 = tpu.matmul %51, %41, %cst_18 {dimension_numbers = #tpu.dot_dimension_numbers<[1], [0], [0], [1], [0, 0, 1, 1], [], []>} : vector<32x640xbf16>, vector<640x128xbf16>, vector<32x128xf32> -> vector<32x128xf32>
    %cst_19 = arith.constant dense<0.000000e+00> : vector<128xf32>
    %53 = vector.multi_reduction <add>, %52, %cst_19 [0] : vector<32x128xf32> to vector<128xf32>
    %54 = vector.shape_cast %53 : vector<128xf32> to vector<1x128xf32>
    %cst_20 = arith.constant 3.125000e-02 : f32
    %55 = vector.broadcast %cst_20 : f32 to vector<1x128xf32>
    %56 = arith.mulf %54, %55 : vector<1x128xf32>
    %57 = arith.mulf %52, %52 : vector<32x128xf32>
    %cst_21 = arith.constant dense<0.000000e+00> : vector<128xf32>
    %58 = vector.multi_reduction <add>, %57, %cst_21 [0] : vector<32x128xf32> to vector<128xf32>
    %59 = vector.shape_cast %58 : vector<128xf32> to vector<1x128xf32>
    %cst_22 = arith.constant 3.125000e-02 : f32
    %60 = vector.broadcast %cst_22 : f32 to vector<1x128xf32>
    %61 = arith.mulf %59, %60 : vector<1x128xf32>
    %62 = arith.mulf %56, %56 : vector<1x128xf32>
    %63 = arith.subf %61, %62 : vector<1x128xf32>
    %cst_23 = arith.constant 9.99999974E-6 : f32
    %64 = vector.broadcast %cst_23 : f32 to vector<1x128xf32>
    %65 = arith.addf %63, %64 : vector<1x128xf32>
    %66 = math.rsqrt %65 : vector<1x128xf32>
    %c0_24 = arith.constant 0 : index
    %c0_25 = arith.constant 0 : index
    %67 = vector.load %arg7[%c0_24, %c0_25] : memref<1x128xf32, #tpu.memory_space<vmem>>, vector<1x128xf32>
    %68 = arith.mulf %66, %67 : vector<1x128xf32>
    %69 = vector.broadcast %68 : vector<1x128xf32> to vector<32x128xf32>
    %70 = arith.mulf %52, %69 : vector<32x128xf32>
    %c0_26 = arith.constant 0 : index
    %c0_27 = arith.constant 0 : index
    %71 = vector.load %arg8[%c0_26, %c0_27] : memref<1x128xf32, #tpu.memory_space<vmem>>, vector<1x128xf32>
    %72 = arith.mulf %56, %68 : vector<1x128xf32>
    %73 = arith.subf %71, %72 : vector<1x128xf32>
    %74 = vector.broadcast %73 : vector<1x128xf32> to vector<32x128xf32>
    %75 = arith.addf %70, %74 : vector<32x128xf32>
    %cst_28 = arith.constant 0.000000e+00 : f32
    %76 = vector.broadcast %cst_28 : f32 to vector<32x128xf32>
    %77 = arith.maximumf %75, %76 : vector<32x128xf32>
    %78 = vector.shape_cast %77 : vector<32x128xf32> to vector<2x16x128xf32>
    %c0_29 = arith.constant 0 : index
    %c0_30 = arith.constant 0 : index
    %79 = vector.load %arg3[%c0_29, %c0_30] : memref<384x128xbf16, #tpu.memory_space<vmem>>, vector<384x128xbf16>
    %cst_31 = arith.constant 0.000000e+00 : f32
    %80 = vector.broadcast %cst_31 : f32 to vector<2x1x128xf32>
    %81 = tpu.concatenate %80, %78, %80 in 1 : vector<2x1x128xf32>, vector<2x16x128xf32>, vector<2x1x128xf32> -> vector<2x18x128xf32>
    %82 = vector.extract_strided_slice %81 {offsets = [0, 0, 0], sizes = [2, 16, 128], strides = [1, 1, 1]} : vector<2x18x128xf32> to vector<2x16x128xf32>
    %83 = vector.extract_strided_slice %81 {offsets = [0, 1, 0], sizes = [2, 16, 128], strides = [1, 1, 1]} : vector<2x18x128xf32> to vector<2x16x128xf32>
    %84 = vector.extract_strided_slice %81 {offsets = [0, 2, 0], sizes = [2, 16, 128], strides = [1, 1, 1]} : vector<2x18x128xf32> to vector<2x16x128xf32>
    %85 = tpu.concatenate %82, %83, %84 in 2 : vector<2x16x128xf32>, vector<2x16x128xf32>, vector<2x16x128xf32> -> vector<2x16x384xf32>
    %86 = vector.shape_cast %85 : vector<2x16x384xf32> to vector<32x384xf32>
    %87 = arith.truncf %86 : vector<32x384xf32> to vector<32x384xbf16>
    %cst_32 = arith.constant dense<0.000000e+00> : vector<32x128xf32>
    %88 = tpu.matmul %87, %79, %cst_32 {dimension_numbers = #tpu.dot_dimension_numbers<[1], [0], [0], [1], [0, 0, 1, 1], [], []>} : vector<32x384xbf16>, vector<384x128xbf16>, vector<32x128xf32> -> vector<32x128xf32>
    %cst_33 = arith.constant dense<0.000000e+00> : vector<128xf32>
    %89 = vector.multi_reduction <add>, %88, %cst_33 [0] : vector<32x128xf32> to vector<128xf32>
    %90 = vector.shape_cast %89 : vector<128xf32> to vector<1x128xf32>
    %cst_34 = arith.constant 3.125000e-02 : f32
    %91 = vector.broadcast %cst_34 : f32 to vector<1x128xf32>
    %92 = arith.mulf %90, %91 : vector<1x128xf32>
    %93 = arith.mulf %88, %88 : vector<32x128xf32>
    %cst_35 = arith.constant dense<0.000000e+00> : vector<128xf32>
    %94 = vector.multi_reduction <add>, %93, %cst_35 [0] : vector<32x128xf32> to vector<128xf32>
    %95 = vector.shape_cast %94 : vector<128xf32> to vector<1x128xf32>
    %cst_36 = arith.constant 3.125000e-02 : f32
    %96 = vector.broadcast %cst_36 : f32 to vector<1x128xf32>
    %97 = arith.mulf %95, %96 : vector<1x128xf32>
    %98 = arith.mulf %92, %92 : vector<1x128xf32>
    %99 = arith.subf %97, %98 : vector<1x128xf32>
    %cst_37 = arith.constant 9.99999974E-6 : f32
    %100 = vector.broadcast %cst_37 : f32 to vector<1x128xf32>
    %101 = arith.addf %99, %100 : vector<1x128xf32>
    %102 = math.rsqrt %101 : vector<1x128xf32>
    %c0_38 = arith.constant 0 : index
    %c0_39 = arith.constant 0 : index
    %103 = vector.load %arg9[%c0_38, %c0_39] : memref<1x128xf32, #tpu.memory_space<vmem>>, vector<1x128xf32>
    %104 = arith.mulf %102, %103 : vector<1x128xf32>
    %105 = vector.broadcast %104 : vector<1x128xf32> to vector<32x128xf32>
    %106 = arith.mulf %88, %105 : vector<32x128xf32>
    %c0_40 = arith.constant 0 : index
    %c0_41 = arith.constant 0 : index
    %107 = vector.load %arg10[%c0_40, %c0_41] : memref<1x128xf32, #tpu.memory_space<vmem>>, vector<1x128xf32>
    %108 = arith.mulf %92, %104 : vector<1x128xf32>
    %109 = arith.subf %107, %108 : vector<1x128xf32>
    %110 = vector.broadcast %109 : vector<1x128xf32> to vector<32x128xf32>
    %111 = arith.addf %106, %110 : vector<32x128xf32>
    %112 = vector.shape_cast %0 : vector<2x16x128xf32> to vector<32x128xf32>
    %113 = arith.truncf %112 : vector<32x128xf32> to vector<32x128xbf16>
    %c0_42 = arith.constant 0 : index
    %c0_43 = arith.constant 0 : index
    %114 = vector.load %arg4[%c0_42, %c0_43] : memref<128x128xbf16, #tpu.memory_space<vmem>>, vector<128x128xbf16>
    %cst_44 = arith.constant dense<0.000000e+00> : vector<32x128xf32>
    %115 = tpu.matmul %113, %114, %cst_44 {dimension_numbers = #tpu.dot_dimension_numbers<[1], [0], [0], [1], [0, 0, 1, 1], [], []>} : vector<32x128xbf16>, vector<128x128xbf16>, vector<32x128xf32> -> vector<32x128xf32>
    %cst_45 = arith.constant dense<0.000000e+00> : vector<128xf32>
    %116 = vector.multi_reduction <add>, %115, %cst_45 [0] : vector<32x128xf32> to vector<128xf32>
    %117 = vector.shape_cast %116 : vector<128xf32> to vector<1x128xf32>
    %cst_46 = arith.constant 3.125000e-02 : f32
    %118 = vector.broadcast %cst_46 : f32 to vector<1x128xf32>
    %119 = arith.mulf %117, %118 : vector<1x128xf32>
    %120 = arith.mulf %115, %115 : vector<32x128xf32>
    %cst_47 = arith.constant dense<0.000000e+00> : vector<128xf32>
    %121 = vector.multi_reduction <add>, %120, %cst_47 [0] : vector<32x128xf32> to vector<128xf32>
    %122 = vector.shape_cast %121 : vector<128xf32> to vector<1x128xf32>
    %cst_48 = arith.constant 3.125000e-02 : f32
    %123 = vector.broadcast %cst_48 : f32 to vector<1x128xf32>
    %124 = arith.mulf %122, %123 : vector<1x128xf32>
    %125 = arith.mulf %119, %119 : vector<1x128xf32>
    %126 = arith.subf %124, %125 : vector<1x128xf32>
    %cst_49 = arith.constant 9.99999974E-6 : f32
    %127 = vector.broadcast %cst_49 : f32 to vector<1x128xf32>
    %128 = arith.addf %126, %127 : vector<1x128xf32>
    %129 = math.rsqrt %128 : vector<1x128xf32>
    %c0_50 = arith.constant 0 : index
    %c0_51 = arith.constant 0 : index
    %130 = vector.load %arg11[%c0_50, %c0_51] : memref<1x128xf32, #tpu.memory_space<vmem>>, vector<1x128xf32>
    %131 = arith.mulf %129, %130 : vector<1x128xf32>
    %132 = vector.broadcast %131 : vector<1x128xf32> to vector<32x128xf32>
    %133 = arith.mulf %115, %132 : vector<32x128xf32>
    %c0_52 = arith.constant 0 : index
    %c0_53 = arith.constant 0 : index
    %134 = vector.load %arg12[%c0_52, %c0_53] : memref<1x128xf32, #tpu.memory_space<vmem>>, vector<1x128xf32>
    %135 = arith.mulf %119, %131 : vector<1x128xf32>
    %136 = arith.subf %134, %135 : vector<1x128xf32>
    %137 = vector.broadcast %136 : vector<1x128xf32> to vector<32x128xf32>
    %138 = arith.addf %133, %137 : vector<32x128xf32>
    %139 = arith.addf %111, %138 : vector<32x128xf32>
    %cst_54 = arith.constant 0.000000e+00 : f32
    %140 = vector.broadcast %cst_54 : f32 to vector<32x128xf32>
    %141 = arith.maximumf %139, %140 : vector<32x128xf32>
    %142 = vector.shape_cast %141 : vector<32x128xf32> to vector<2x16x128xf32>
    %c0_55 = arith.constant 0 : index
    %c0_56 = arith.constant 0 : index
    %c0_57 = arith.constant 0 : index
    %143 = vector.load %arg13[%c0_55, %c0_56, %c0_57] : memref<2x16x128xf32, #tpu.memory_space<vmem>>, vector<2x16x128xf32>
    tpu.vector_store %arg13[%c0_55, %c0_56, %c0_57], %142 {strides = array<i32>} : memref<2x16x128xf32, #tpu.memory_space<vmem>>, vector<2x16x128xf32>,
    return
  }
}

</mosaic_0001>

<bundles_post_ra>
// kernel: block_standard.1
= control target key start
LH: loop header
LB: loop body
LE: loop exit
PB: predicated region body
PF: predicated region fallthrough
CT: control target
= control target key end

     0   :  { %vm166_vm0 = vcmask 1042432   ;;  %vm187_vm1 = vcmask 1046528   ;;  %vm217_vm2 = vcmask 1044480   ;;  %vm202_vm4 = vcmask 1045504   ;;  %s3432_s0 = inlined_call_operand.vmem [shape: f32[2,16,128], index: 0, kind: input, shape index: {}]   ;;  %s3433_s1 = inlined_call_operand.vmem [shape: bf16[896,128], index: 1, kind: input, shape index: {}]   ;;  %s3434_s2 = inlined_call_operand.vmem [shape: bf16[640,128], index: 2, kind: input, shape index: {}]   ;;  %s3435_s3 = inlined_call_operand.vmem [shape: bf16[384,128], index: 3, kind: input, shape index: {}]   ;;  %s3436_s4 = inlined_call_operand.vmem [shape: bf16[128,128], index: 4, kind: input, shape index: {}]   ;;  %s3437_s5 = inlined_call_operand.vmem [shape: f32[1,128], index: 5, kind: input, shape index: {}]   ;;  %s3438_s6 = inlined_call_operand.vmem [shape: f32[1,128], index: 6, kind: input, shape index: {}]   ;;  %s3439_s7 = inlined_call_operand.vmem [shape: f32[1,128], index: 7, kind: input, shape index: {}]   ;;  %s3440_s8 = inlined_call_operand.vmem [shape: f32[1,128], index: 8, kind: input, shape index: {}]   ;;  %s3441_s9 = inlined_call_operand.vmem [shape: f32[1,128], index: 9, kind: input, shape index: {}]   ;;  %s3442_s10 = inlined_call_operand.vmem [shape: f32[1,128], index: 10, kind: input, shape index: {}]   ;;  %s3443_s11 = inlined_call_operand.vmem [shape: f32[1,128], index: 11, kind: input, shape index: {}]   ;;  %s3444_s12 = inlined_call_operand.vmem [shape: f32[1,128], index: 12, kind: input, shape index: {}]   ;;  %s3445_s13 = inlined_call_operand.hbm [shape: f32[2,16,128], index: 13, kind: output, shape index: {}]  }
   0x1   :  { %v2527_v0 = vld [vmem:[%s3433_s1 + $0x78] sm:$0xff]   ;;  %v2531_v4 = vld [vmem:[%s3433_s1 + $0x70] sm:$0xff]   ;;  %v2535_v8 = vld [vmem:[%s3433_s1 + $0x68] sm:$0xff]   ;;  %vm2689_vm5 = vmmov 1   ;;  %vm261_vm7 = vcmask 1041408   ;;  %vm232_vm8 = vcmask 1043456  }
   0x2   :  { %v2528_v1 = vld [vmem:[%s3433_s1 + $0xf8] sm:$0xff]   ;;  %2235 = vmatprep.subr.bf16.mxu0 %v2527_v0  ;;  %v2532_v5 = vld [vmem:[%s3433_s1 + $0xf0] sm:$0xff]   ;;  %v2536_v9 = vld [vmem:[%s3433_s1 + $0xe8] sm:$0xff]  }
   0x3   :  { %v2529_v2 = vld [vmem:[%s3433_s1 + $0x38] sm:$0xff]   ;;  %2263 = vmatprep.subr.bf16.mxu1 %v2528_v1  ;;  %v2533_v6 = vld [vmem:[%s3433_s1 + $0x30] sm:$0xff]   ;;  %v2537_v10 = vld [vmem:[%s3433_s1 + $0x28] sm:$0xff]  }
   0x4   :  { %v2530_v3 = vld [vmem:[%s3433_s1 + $0xb8] sm:$0xff]   ;;  %2236 = vmatpush3.bf16.msra.mxu0 %v2529_v2  ;;  %v2534_v7 = vld [vmem:[%s3433_s1 + $0xb0] sm:$0xff]   ;;  %v2538_v11 = vld [vmem:[%s3433_s1 + $0xa8] sm:$0xff]  }
   0x5   :  { %2264 = vmatpush3.bf16.msra.mxu1 %v2530_v3  ;;  %2237 = vmatprep.subr.bf16.mxu0 %v2531_v4  ;;  %v2539_v12 = vld [vmem:[%s3433_s1 + $0x60] sm:$0xff]   ;;  %v2543_v16 = vld [vmem:[%s3433_s1 + $0x58] sm:$0xff]   ;;  %v2547_v20 = vld [vmem:[%s3433_s1 + $0x50] sm:$0xff]  }
   0x6   :  { %2265 = vmatprep.subr.bf16.mxu1 %v2532_v5  ;;  %v2540_v13 = vld [vmem:[%s3433_s1 + $0xe0] sm:$0xff]   ;;  %v2544_v17 = vld [vmem:[%s3433_s1 + $0xd8] sm:$0xff]   ;;  %v2548_v21 = vld [vmem:[%s3433_s1 + $0xd0] sm:$0xff]  }
   0x7   :  { %v2541_v14 = vld [vmem:[%s3433_s1 + $0x20] sm:$0xff]   ;;  %v2545_v18 = vld [vmem:[%s3433_s1 + $0x18] sm:$0xff]   ;;  %v2549_v22 = vld [vmem:[%s3433_s1 + $0x10] sm:$0xff]  }
   0x8   :  { %2238 = vmatpush3.bf16.msra.mxu0 %v2533_v6  ;;  %v2542_v15 = vld [vmem:[%s3433_s1 + $0xa0] sm:$0xff]   ;;  %v2546_v19 = vld [vmem:[%s3433_s1 + $0x98] sm:$0xff]   ;;  %v2550_v23 = vld [vmem:[%s3433_s1 + $0x90] sm:$0xff]  }
   0x9   :  { %2266 = vmatpush3.bf16.msra.mxu1 %v2534_v7  ;;  %2239 = vmatprep.subr.bf16.mxu0 %v2535_v8  ;;  %v2551_v24 = vld [vmem:[%s3433_s1 + $0x48] sm:$0xff]   ;;  %v2555_v28 = vld [vmem:[%s3433_s1 + $0x40] sm:$0xff]   ;;  %v2559_v36 = vld [vmem:[%s3433_s1 + $0x178] sm:$0xff]  }
   0xa   :  { %2267 = vmatprep.subr.bf16.mxu1 %v2536_v9  ;;  %v2552_v25 = vld [vmem:[%s3433_s1 + $0xc8] sm:$0xff]   ;;  %v2556_v29 = vld [vmem:[%s3433_s1 + $0xc0] sm:$0xff]   ;;  %vm2878_vm3 = vmneg %vm166_vm0 }
   0xb   :  { %v2553_v26 = vld [vmem:[%s3433_s1 + $0x8] sm:$0xff]   ;;  %v2557_v30 = vld [vmem:[%s3433_s1] sm:$0xff]   ;;  %v2561_v49 = vld [vmem:[%s3433_s1 + $0x1b8] sm:$0xff]  }
   0xc   :  { %2240 = vmatpush3.bf16.msra.mxu0 %v2537_v10  ;;  %v2554_v27 = vld [vmem:[%s3433_s1 + $0x88] sm:$0xff]   ;;  %v2558_v31 = vld [vmem:[%s3433_s1 + $0x80] sm:$0xff]   ;;  %vm2898_vm6 = vmpackc.low %vm2689_vm5, %vm2878_vm3 }
   0xd   :  { %2268 = vmatpush3.bf16.msra.mxu1 %v2538_v11  ;;  %2241 = vmatprep.subr.bf16.mxu0 %v2539_v12  ;;  %v46_v32 = vld [vmem:[%s3432_s0] sm:$0xff]  ;;  %v47_v33 = vld [vmem:[%s3432_s0 + $0x8] sm:$0xff]  ;;  %v2560_v58 = vld [vmem:[%s3433_s1 + $0x138] sm:$0xff]  }
   0xe   :  { %2269 = vmatprep.subr.bf16.mxu1 %v2540_v13  ;;  %v167_v34 = vrot.slane %v46_v32, 5  ;;  %v168_v35 = vrot.slane %v47_v33, 5  ;;  %v2562_v62 = vld [vmem:[%s3433_s1 + $0x170] sm:$0xff]   ;;  %v2565_v2 = vld [vmem:[%s3433_s1 + $0x168] sm:$0xff]   ;;  %v2568_v7 = vld [vmem:[%s3433_s1 + $0x160] sm:$0xff]  }
   0xf   :  { %v2564_v0 = vld [vmem:[%s3433_s1 + $0x1b0] sm:$0xff]   ;;  %v2566_v4 = vld [vmem:[%s3433_s1 + $0x128] sm:$0xff]   ;;  %v2570_v11 = vld [vmem:[%s3433_s1 + $0x1a0] sm:$0xff]  }
  0x10   :  { %2242 = vmatpush3.bf16.msra.mxu0 %v2541_v14  ;;  %v2869_v37 = vsel %vm166_vm0, %v167_v34, %v168_v35  ;;  %v2872_v38 = vsel %vm166_vm0, 0.0, %v167_v34  ;;  %v2875_v39 = vsel %vm166_vm0, %v168_v35, 0.0  ;;  %v2563_v1 = vld [vmem:[%s3433_s1 + $0x130] sm:$0xff]   ;;  %v2567_v5 = vld [vmem:[%s3433_s1 + $0x1a8] sm:$0xff]   ;;  %v49_v13 = vld [vmem:[%s3432_s0 + $0x18] sm:$0xff] }
  0x11   :  { %2270 = vmatpush3.bf16.msra.mxu1 %v2542_v15  ;;  %2243 = vmatprep.subr.bf16.mxu0 %v2543_v16  ;;  %v188_v41 = vrot.slane %v2872_v38, 1  ;;  %v189_v42 = vrot.slane %v2869_v37, 1  ;;  %v191_v43 = vrot.slane %v2875_v39, 1  ;;  %v218_v44 = vrot.slane %v2872_v38, 3  ;;  %v48_v12 = vld [vmem:[%s3432_s0 + $0x10] sm:$0xff]  ;;  %v2573_v35 = vld [vmem:[%s3433_s1 + $0x198] sm:$0xff]  }
  0x12   :  { %2271 = vmatprep.subr.bf16.mxu1 %v2544_v17  ;;  %v219_v45 = vrot.slane %v2869_v37, 3  ;;  %v221_v46 = vrot.slane %v2875_v39, 3  ;;  %v2141_v47 = vpack.c.bf16 %v2869_v37, %v167_v34  ;;  %v203_v48 = vrot.slane %v2872_v38, 2 }
  0x13   :  { %v190_v50 = vsel %vm187_vm1, %v188_v41, %v189_v42  ;;  %v192_v51 = vsel %vm187_vm1, %v189_v42, %v191_v43  ;;  %v204_v53 = vrot.slane %v2869_v37, 2  ;;  %v206_v54 = vrot.slane %v2875_v39, 2 }
  0x14   :  { %2244 = vmatpush3.bf16.msra.mxu0 %v2545_v18  ;;  %v277_v55 = vpack.c.bf16 %v192_v51, %v190_v50  ;;  %v220_v56 = vsel %vm217_vm2, %v218_v44, %v219_v45  ;;  %v222_v57 = vsel %vm217_vm2, %v219_v45, %v221_v46  ;;  %v247_v3 = vrot.slane %v2872_v38, 5  ;;  %v2572_v46 = vld [vmem:[%s3433_s1 + $0x118] sm:$0xff]   ;;  %v2574_v51 = vld [vmem:[%s3433_s1 + $0x150] sm:$0xff]  }
  0x15   :  { %2272 = vmatpush3.bf16.msra.mxu1 %v2546_v19  ;;  %2245 = vmatprep.subr.bf16.mxu0 %v2547_v20  ;;  %v279_v59 = vpack.c.bf16 %v222_v57, %v220_v56  ;;  %v205_v60 = vsel %vm202_vm4, %v203_v48, %v204_v53  ;;  %v207_v61 = vsel %vm202_vm4, %v204_v53, %v206_v54  ;;  %v248_v6 = vrot.slane %v2869_v37, 5  ;;  %v2576_v56 = vld [vmem:[%s3433_s1 + $0x190] sm:$0xff]  }
  0x16   :  { %2273 = vmatprep.subr.bf16.mxu1 %v2548_v21  ;;  %658 = vmatprep.mubr.bf16.mxu0 %v277_v55  ;;  %v278_v63 = vpack.c.bf16 %v207_v61, %v205_v60  ;;  %v250_v8 = vrot.slane %v2875_v39, 5  ;;  %v262_v9 = vrot.slane %v2872_v38, 6  ;;  %v263_v10 = vrot.slane %v2869_v37, 6  ;;  %v2569_v21 = vld [vmem:[%s3433_s1 + $0x120] sm:$0xff]   ;;  %v2575_v55 = vld [vmem:[%s3433_s1 + $0x110] sm:$0xff]   ;;  %v2579_v61 = vld [vmem:[%s3433_s1 + $0x188] sm:$0xff]  }
  0x17   :  { %707 = vmatprep.mubr.bf16.mxu1 %v279_v59  ;;  %v233_v14 = vrot.slane %v2872_v38, 4  ;;  %v170_v15 = vrot.slane %v48_v12, 5  ;;  %v171_v16 = vrot.slane %v49_v13, 5  ;;  %v2950_v17 = vsel %vm166_vm0, %v247_v3, %v248_v6 }
  0x18   :  { %2246 = vmatpush3.bf16.msra.mxu0 %v2549_v22  ;;  %v251_v18 = vsel %vm166_vm0, %v248_v6, %v250_v8  ;;  %v234_v19 = vrot.slane %v2869_v37, 4  ;;  %v265_v20 = vrot.slane %v2875_v39, 6  ;;  %v2571_v22 = vld [vmem:[%s3433_s1 + $0x158] sm:$0xff]   ;;  %v236_v53 = vrot.slane %v2875_v39, 4  ;;  %v2577_v39 = vld [vmem:[%s3433_s1 + $0x148] sm:$0xff]   ;;  %v2582_v6 = vld [vmem:[%s3433_s1 + $0x180] sm:$0xff]  }
  0x19   :  { %2274 = vmatpush3.bf16.msra.mxu1 %v2550_v23  ;;  %2247 = vmatprep.subr.bf16.mxu0 %v2551_v24  ;;  %v2962_v23 = vsel %vm166_vm0, %v170_v15, %v171_v16  ;;  %v2965_v24 = vsel %vm166_vm0, 0.0, %v170_v15  ;;  %v281_v57 = vpack.c.bf16 %v251_v18, %v2950_v17 }
  0x1a   :  { %2275 = vmatprep.subr.bf16.mxu1 %v2552_v25  ;;  %v2968_v25 = vsel %vm166_vm0, %v171_v16, 0.0  ;;  %v2145_v33 = vpack.c.bf16 %v2962_v23, %v170_v15  ;;  %v208_v34 = vrot.slane %v2965_v24, 2  ;;  %v209_v41 = vrot.slane %v2962_v23, 2 }
  0x1b   :  { %v226_v32 = vrot.slane %v2968_v25, 3  ;;  %v211_v42 = vrot.slane %v2968_v25, 2  ;;  %v268_v60 = vrot.slane %v2962_v23, 6  ;;  %v252_v52 = vrot.slane %v2965_v24, 5 }
  0x1c   :  { %2248 = vmatpush3.bf16.msra.mxu0 %v2553_v26  ;;  %v264_v26 = vsel %vm261_vm7, %v262_v9, %v263_v10  ;;  %v239_v3 = vrot.slane %v2962_v23, 4  ;;  %v235_v8 = vsel %vm232_vm8, %v233_v14, %v234_v19  ;;  %v237_v9 = vsel %vm232_vm8, %v234_v19, %v236_v53 }
  0x1d   :  { %2276 = vmatpush3.bf16.msra.mxu1 %v2554_v27  ;;  %2249 = vmatprep.subr.bf16.mxu0 %v2555_v28  ;;  %v193_v27 = vrot.slane %v2965_v24, 1  ;;  %v194_v28 = vrot.slane %v2962_v23, 1  ;;  %v212_v50 = vsel %vm202_vm4, %v209_v41, %v211_v42  ;;  %v280_v15 = vpack.c.bf16 %v237_v9, %v235_v8 }
  0x1e   :  { %2277 = vmatprep.subr.bf16.mxu1 %v2556_v29  ;;  %v196_v29 = vrot.slane %v2968_v25, 1 }
  0x20   :  { %2250 = vmatpush3.bf16.msra.mxu0 %v2557_v30  ;;  %v223_v30 = vrot.slane %v2965_v24, 3  ;;  %v197_v40 = vsel %vm187_vm1, %v194_v28, %v196_v29 }
  0x21   :  { %2278 = vmatpush3.bf16.msra.mxu1 %v2558_v31  ;;  %2291 = vmatprep.subr.bf16.mxu0 %v2559_v36  ;;  %v224_v31 = vrot.slane %v2962_v23, 3  ;;  %v195_v36 = vsel %vm187_vm1, %v193_v27, %v194_v28 }
  0x22   :  { %2443 = vmatprep.subr.bf16.mxu1 %v2561_v49  ;;  %v284_v43 = vpack.c.bf16 %v197_v40, %v195_v36 }
  0x23   :  { %2142 = vmatmul.mubr.msk.bf16.vlgmr.msra.gmra.mxu0 %vm2898_vm6, %v2141_v47  ;;  %v225_v44 = vsel %vm217_vm2, %v223_v30, %v224_v31  ;;  %v227_v45 = vsel %vm217_vm2, %v224_v31, %v226_v32  ;;  %v266_v47 = vsel %vm261_vm7, %v263_v10, %v265_v20 }
  0x24   :  { %708 = vmatmul.mubr.bf16.vlgmr.msra.gmra.mxu1 %v278_v63  ;;  %2292 = vmatpush3.bf16.msra.mxu0 %v2560_v58  ;;  %v286_v48 = vpack.c.bf16 %v227_v45, %v225_v44  ;;  %v267_v58 = vrot.slane %v2965_v24, 6  ;;  %v282_v59 = vpack.c.bf16 %v266_v47, %v264_v26  ;;  %v253_v63 = vrot.slane %v2962_v23, 5 }
  0x25   :  { %2444 = vmatpush3.bf16.msra.mxu1 %v2561_v49  ;;  %2293 = vmatprep.subr.bf16.mxu0 %v2562_v62  ;;  %v210_v49 = vsel %vm202_vm4, %v208_v34, %v209_v41  ;;  %v270_v62 = vrot.slane %v2968_v25, 6 }
  0x26   :  { %2445 = vmatprep.subr.bf16.mxu1 %v2564_v0  ;;  %666 = vmatprep.mubr.bf16.mxu0 %v284_v43  ;;  %v285_v54 = vpack.c.bf16 %v212_v50, %v210_v49  ;;  %v269_v10 = vsel %vm261_vm7, %v267_v58, %v268_v60  ;;  %v254_v12 = vsel %vm166_vm0, %v252_v52, %v253_v63 }
  0x27   :  { %715 = vmatprep.mubr.bf16.mxu1 %v286_v48 }
  0x28   :  { %2294 = vmatpush3.bf16.msra.mxu0 %v2563_v1  ;;  %v255_v1 = vrot.slane %v2968_v25, 5 }
  0x29   :  { %2446 = vmatpush3.bf16.msra.mxu1 %v2564_v0  ;;  %2295 = vmatprep.subr.bf16.mxu0 %v2565_v2  ;;  %v2578_v0 = vld [vmem:[%s3433_s1 + $0x108] sm:$0xff]   ;;  %v238_v2 = vrot.slane %v2965_v24, 4 }
  0x2a   :  { %2447 = vmatprep.subr.bf16.mxu1 %v2567_v5  ;;  %v256_v13 = vsel %vm166_vm0, %v253_v63, %v255_v1 }
  0x2b   :  { %2146 = vmatmul.mubr.msk.bf16.gmra.mxu0 %vm2898_vm6, %v2145_v33  ;;  %v288_v16 = vpack.c.bf16 %v256_v13, %v254_v12  ;;  %v240_v37 = vsel %vm232_vm8, %v238_v2, %v239_v3 }
  0x2c   :  { %2296 = vmatpush3.bf16.msra.mxu0 %v2566_v4  ;;  %716 = vmatmul.mubr.bf16.gmra.mxu1 %v285_v54  ;;  %v241_v4 = vrot.slane %v2968_v25, 4 }
  0x2d   :  { %2448 = vmatpush3.bf16.msra.mxu1 %v2567_v5  ;;  %2297 = vmatprep.subr.bf16.mxu0 %v2568_v7  ;;  %v2580_v5 = vld [vmem:[%s3433_s1 + $0x140] sm:$0xff]  }
  0x2e   :  { %2449 = vmatprep.subr.bf16.mxu1 %v2570_v11  ;;  %756 = vmatprep.mubr.bf16.mxu0 %v281_v57  ;;  %v2581_v7 = vld [vmem:[%s3433_s1 + $0x100] sm:$0xff]   ;;  %v242_v14 = vsel %vm232_vm8, %v239_v3, %v241_v4 }
  0x2f   :  { %2459 = vmatprep.mubr.bf16.mxu1 %v282_v59  ;;  %v287_v17 = vpack.c.bf16 %v242_v14, %v240_v37 }
  0x30   :  { %2298 = vmatpush3.bf16.msra.mxu0 %v2569_v21 }
  0x31   :  { %2450 = vmatpush3.bf16.msra.mxu1 %v2570_v11  ;;  %2299 = vmatprep.subr.bf16.mxu0 %v2571_v22  ;;  %v271_v11 = vsel %vm261_vm7, %v268_v60, %v270_v62 }
  0x32   :  { %2451 = vmatprep.subr.bf16.mxu1 %v2573_v35  ;;  %v289_v38 = vpack.c.bf16 %v271_v11, %v269_v10 }
  0x34   :  { %2300 = vmatpush3.bf16.msra.mxu0 %v2572_v46 }
  0x35   :  { %2452 = vmatpush3.bf16.msra.mxu1 %v2573_v35  ;;  %2301 = vmatprep.subr.bf16.mxu0 %v2574_v51 }
  0x36   :  { %2453 = vmatprep.subr.bf16.mxu1 %v2576_v56 }
  0x38   :  { %2302 = vmatpush3.bf16.msra.mxu0 %v2575_v55 }
  0x39   :  { %2454 = vmatpush3.bf16.msra.mxu1 %v2576_v56  ;;  %2303 = vmatprep.subr.bf16.mxu0 %v2577_v39 }
  0x3a   :  { %2455 = vmatprep.subr.bf16.mxu1 %v2579_v61 }
  0x3c   :  { %2304 = vmatpush3.bf16.msra.mxu0 %v2578_v0 }
  0x3d   :  { %2456 = vmatpush3.bf16.msra.mxu1 %v2579_v61  ;;  %2305 = vmatprep.subr.bf16.mxu0 %v2580_v5 }
  0x3e   :  { %2457 = vmatprep.subr.bf16.mxu1 %v2582_v6 }
  0x40   :  { %2306 = vmatpush3.bf16.msra.mxu0 %v2581_v7 }
  0x41   :  { %2458 = vmatpush3.bf16.msra.mxu1 %v2582_v6 }
  0x43   :  { %757 = vmatmul.mubr.bf16.vlgmr.msra.gmra.mxu0 %v280_v15 }
  0x44   :  { %2460 = vmatmul.mubr.bf16.vlgmr.msra.gmra.mxu1 %v289_v38  ;;  %764 = vmatprep.mubr.bf16.mxu0 %v288_v16 }
  0x4b   :  { %765 = vmatmul.mubr.bf16.gmra.mxu0 %v287_v17 }
  0x4c   :  { %18 = vsyncpa [#allocation3], 0  ;;  %v2583_v18 = vld [vmem:[%s3434_s2 + $0x78] sm:$0xff]   ;;  %v2587_v22 = vld [vmem:[%s3434_s2 + $0x70] sm:$0xff]   ;;  %vm1541_vm11 = vcmask 1040384  }
  0x4d   :  { %v2584_v19 = vld [vmem:[%s3434_s2 + $0x38] sm:$0xff]   ;;  %2329 = vmatprep.subr.bf16.mxu0 %v2583_v18  ;;  %v2588_v23 = vld [vmem:[%s3434_s2 + $0x30] sm:$0xff]   ;;  %v2591_v26 = vld [vmem:[%s3434_s2 + $0x68] sm:$0xff]  }
  0x4e   :  { %v2585_v20 = vld [vmem:[%s3434_s2 + $0xf8] sm:$0xff]   ;;  %2330 = vmatpush3.bf16.msra.mxu0 %v2584_v19  ;;  %v2589_v24 = vld [vmem:[%s3434_s2 + $0xf0] sm:$0xff]   ;;  %v2592_v27 = vld [vmem:[%s3434_s2 + $0x28] sm:$0xff]  }
  0x4f   :  { %v2586_v21 = vld [vmem:[%s3434_s2 + $0xb8] sm:$0xff]   ;;  %2357 = vmatprep.subr.bf16.mxu1 %v2585_v20  ;;  %2331 = vmatprep.subr.bf16.mxu0 %v2587_v22  ;;  %v2590_v25 = vld [vmem:[%s3434_s2 + $0xb0] sm:$0xff]   ;;  %v2593_v28 = vld [vmem:[%s3434_s2 + $0xe8] sm:$0xff]  }
  0x50   :  { %2358 = vmatpush3.bf16.msra.mxu1 %v2586_v21  ;;  %v2594_v29 = vld [vmem:[%s3434_s2 + $0xa8] sm:$0xff]   ;;  %v2595_v30 = vld [vmem:[%s3434_s2 + $0x60] sm:$0xff]   ;;  %v2599_v34 = vld [vmem:[%s3434_s2 + $0x58] sm:$0xff]  }
  0x51   :  { %2359 = vmatprep.subr.bf16.mxu1 %v2589_v24  ;;  %v2596_v31 = vld [vmem:[%s3434_s2 + $0x20] sm:$0xff]   ;;  %v2600_v35 = vld [vmem:[%s3434_s2 + $0x18] sm:$0xff]   ;;  %v2603_v41 = vld [vmem:[%s3434_s2 + $0x50] sm:$0xff]  }
  0x52   :  { %2332 = vmatpush3.bf16.msra.mxu0 %v2588_v23  ;;  %v2597_v32 = vld [vmem:[%s3434_s2 + $0xe0] sm:$0xff]   ;;  %v2601_v36 = vld [vmem:[%s3434_s2 + $0xd8] sm:$0xff]   ;;  %v2604_v42 = vld [vmem:[%s3434_s2 + $0x10] sm:$0xff]  }
  0x53   :  { %2333 = vmatprep.subr.bf16.mxu0 %v2591_v26  ;;  %v2598_v33 = vld [vmem:[%s3434_s2 + $0xa0] sm:$0xff]   ;;  %v2602_v40 = vld [vmem:[%s3434_s2 + $0x98] sm:$0xff]   ;;  %v2605_v43 = vld [vmem:[%s3434_s2 + $0xd0] sm:$0xff]  }
  0x54   :  { %2360 = vmatpush3.bf16.msra.mxu1 %v2590_v25  ;;  %v2606_v44 = vld [vmem:[%s3434_s2 + $0x90] sm:$0xff]   ;;  %v2607_v45 = vld [vmem:[%s3434_s2 + $0x48] sm:$0xff]   ;;  %v2611_v49 = vld [vmem:[%s3434_s2 + $0x40] sm:$0xff]  }
  0x55   :  { %2361 = vmatprep.subr.bf16.mxu1 %v2593_v28  ;;  %v2608_v46 = vld [vmem:[%s3434_s2 + $0x8] sm:$0xff]   ;;  %v2613_v50 = vld [vmem:[%s3434_s2 + $0xc0] sm:$0xff]   ;;  %v3147_v54 = vld [vmem:[%s3434_s2 + $0x138] sm:$0xff]  }
  0x56   :  { %2334 = vmatpush3.bf16.msra.mxu0 %v2592_v27  ;;  %v2609_v47 = vld [vmem:[%s3434_s2 + $0xc8] sm:$0xff]   ;;  %v2612_v51 = vld [vmem:[%s3434_s2] sm:$0xff]   ;;  %vm2187_vm9 = vmneg %vm261_vm7 }
  0x57   :  { %2335 = vmatprep.subr.bf16.mxu0 %v2595_v30  ;;  %v2610_v48 = vld [vmem:[%s3434_s2 + $0x88] sm:$0xff]   ;;  %v2614_v53 = vld [vmem:[%s3434_s2 + $0x80] sm:$0xff]   ;;  %vm3179_vm10 = vmpackc.low %vm2689_vm5, %vm2187_vm9 }
  0x58   :  { %2362 = vmatpush3.bf16.msra.mxu1 %v2594_v29  ;;  %vm2219_vm12 = vmneg %vm1541_vm11 }
  0x59   :  { %2363 = vmatprep.subr.bf16.mxu1 %v2597_v32  ;;  %vm3341_vm13 = vmpackc.low %vm2689_vm5, %vm2219_vm12 }
  0x5a   :  { %2336 = vmatpush3.bf16.msra.mxu0 %v2596_v31 }
  0x5b   :  { %2337 = vmatprep.subr.bf16.mxu0 %v2599_v34 }
  0x5c   :  { %2364 = vmatpush3.bf16.msra.mxu1 %v2598_v33 }
  0x5d   :  { %2365 = vmatprep.subr.bf16.mxu1 %v2601_v36 }
  0x5e   :  { %2338 = vmatpush3.bf16.msra.mxu0 %v2600_v35 }
  0x5f   :  { %2339 = vmatprep.subr.bf16.mxu0 %v2603_v41 }
  0x60   :  { %2366 = vmatpush3.bf16.msra.mxu1 %v2602_v40 }
  0x61   :  { %2367 = vmatprep.subr.bf16.mxu1 %v2605_v43 }
  0x62   :  { %2340 = vmatpush3.bf16.msra.mxu0 %v2604_v42 }
  0x63   :  { %2341 = vmatprep.subr.bf16.mxu0 %v2607_v45 }
  0x64   :  { %2368 = vmatpush3.bf16.msra.mxu1 %v2606_v44 }
  0x65   :  { %2369 = vmatprep.subr.bf16.mxu1 %v2609_v47 }
  0x66   :  { %2342 = vmatpush3.bf16.msra.mxu0 %v2608_v46 }
  0x67   :  { %2343 = vmatprep.subr.bf16.mxu0 %v2611_v49 }
  0x68   :  { %2370 = vmatpush3.bf16.msra.mxu1 %v2610_v48 }
  0x69   :  { %2371 = vmatprep.subr.bf16.mxu1 %v2613_v50 }
  0x6a   :  { %2344 = vmatpush3.bf16.msra.mxu0 %v2612_v51 }
  0x6b   :  { %2463 = vmatprep.subr.bf16.mxu0 %v3147_v54 }
  0x6c   :  { %2372 = vmatpush3.bf16.msra.mxu1 %v2614_v53 }
  0xe3   :  { %v2251_v55 = vpop.f32.mrf.mxu0 }
  0xe4   :  { %v2279_v56 = vpop.f32.mrf.mxu1 }
  0xe5   :  { %v2252_v57 = vpop.f32.mrf.mxu0 }
  0xe6   :  { %v2280_v58 = vpop.f32.mrf.mxu1  ;;  %v2253_v8 = vadd.f32 %v2252_v57, %v2251_v55 }
  0xe7   :  { %v2254_v39 = vpop.f32.mrf.mxu0  ;;  %v2281_v9 = vadd.f32 %v2280_v58, %v2279_v56 }
  0xe8   :  { %v2282_v59 = vpop.f32.mrf.mxu1 }
  0xe9   :  { %v2255_v60 = vpop.f32.mrf.mxu0  ;;  %v710_v17 = vadd.f32 %v2281_v9, %v2253_v8 }
  0xea   :  { %v2283_v61 = vpop.f32.mrf.mxu1  ;;  %v2256_v10 = vadd.f32 %v2255_v60, %v2254_v39 }
  0xeb   :  { %v2257_v62 = vpop.f32.mrf.mxu0  ;;  %v2284_v11 = vadd.f32 %v2283_v61, %v2282_v59 }
  0xec   :  { %v2285_v52 = vpop.f32.mrf.mxu1 }
  0xed   :  { %v2258_v63 = vpop.f32.mrf.mxu0  ;;  %v713_v18 = vadd.f32 %v2284_v11, %v2256_v10  ;;  %v860_v11 = vld [vmem:[%s3438_s6] sm:$0x1] }
  0xee   :  { %v2286_v0 = vpop.f32.mrf.mxu1  ;;  %v2259_v38 = vadd.f32 %v2258_v63, %v2257_v62 }
  0xef   :  { %v2260_v1 = vpop.f32.mrf.mxu0  ;;  %v2287_v16 = vadd.f32 %v2286_v0, %v2285_v52 }
  0xf0   :  { %v2288_v2 = vpop.f32.mrf.mxu1 }
  0xf1   :  { %v2261_v3 = vpop.f32.mrf.mxu0  ;;  %v718_v23 = vadd.f32 %v2287_v16, %v2259_v38 }
  0xf2   :  { %v2289_v4 = vpop.f32.mrf.mxu1  ;;  %v2262_v26 = vadd.f32 %v2261_v3, %v2260_v1 }
  0xf3   :  { %v2290_v27 = vadd.f32 %v2289_v4, %v2288_v2 }
  0xf5   :  { %v721_v34 = vadd.f32 %v2290_v27, %v2262_v26 }
 0x103   :  { %v2307_v5 = vpop.f32.mrf.mxu0 }
 0x104   :  { %v2461_v6 = vpop.f32.mrf.mxu1 }
 0x105   :  { %v2308_v7 = vpop.f32.mrf.mxu0 }
 0x106   :  { %v807_v12 = vpop.f32.mrf.mxu1  ;;  %v2309_v15 = vadd.f32 %v2308_v7, %v2307_v5  ;;  %v852_v5 = vlaneseq  ;;  %v850_v7 = vld [vmem:[%s3437_s5] sm:$0x1] }
 0x107   :  { %v2310_v13 = vpop.f32.mrf.mxu0 }
 0x108   :  { %v2462_v14 = vpop.f32.mrf.mxu1  ;;  %v759_v21 = vadd.f32 %v2309_v15, %v710_v17 }
 0x109   :  { %v2311_v37 = vpop.f32.mrf.mxu0 }
 0x10a   :  { %v2312_v19 = vadd.f32 %v2311_v37, %v2310_v13  ;;  %v810_v24 = vpop.f32.mrf.mxu1  ;;  %v808_v31 = vadd.f32 %v807_v12, %v759_v21 }
 0x10b   :  { %v2313_v20 = vpop.f32.mrf.mxu0 }
 0x10c   :  { %v762_v22 = vadd.f32 %v2312_v19, %v713_v18  ;;  %v832_v41 = vmul.f32 %v808_v31, %v808_v31 }
 0x10d   :  { %v2314_v25 = vpop.f32.mrf.mxu0 }
 0x10e   :  { %v811_v28 = vadd.f32 %v810_v24, %v762_v22  ;;  %v2315_v29 = vadd.f32 %v2314_v25, %v2313_v20 }
 0x10f   :  { %v2316_v30 = vpop.f32.mrf.mxu0 }
 0x110   :  { %v767_v32 = vadd.f32 %v2315_v29, %v718_v23  ;;  %v833_v35 = vmul.f32 %v811_v28, %v811_v28  ;;  %v822_v42 = vadd.f32 %v811_v28, %v808_v31 }
 0x111   :  { %v2317_v33 = vpop.f32.mrf.mxu0 }
 0x112   :  { %v816_v36 = vadd.f32 %v2461_v6, %v767_v32  ;;  %v2318_v40 = vadd.f32 %v2317_v33, %v2316_v30  ;;  %v836_v45 = vadd.f32 %v833_v35, %v832_v41  ;;  %v853_v6 = vshrl.u32 %v852_v5, 7 }
 0x114   :  { %v834_v43 = vmul.f32 %v816_v36, %v816_v36  ;;  %v770_v44 = vadd.f32 %v2318_v40, %v721_v34  ;;  %v823_v46 = vadd.f32 %v822_v42, %v816_v36  ;;  %v3153_v8 = vsub.s32 0, %v853_v6 }
 0x116   :  { %v819_v47 = vadd.f32 %v2462_v14, %v770_v44  ;;  %v837_v48 = vadd.f32 %v836_v45, %v834_v43 }
 0x118   :  { %v824_v49 = vadd.f32 %v823_v46, %v819_v47  ;;  %v835_v50 = vmul.f32 %v819_v47, %v819_v47 }
 0x11a   :  { %v825_v51 = vrot.slane %v824_v49, 4  ;;  %v838_v53 = vadd.f32 %v837_v48, %v835_v50 }
 0x11c   :  { %v826_v55 = vadd.f32 %v825_v51, %v824_v49  ;;  %v839_v56 = vrot.slane %v838_v53, 4  ;;  %v2638_v49 = vld [vmem:[%s3435_s3 + $0x50] sm:$0xff]  }
 0x11e   :  { %v827_v57 = vrot.slane %v826_v55, 2  ;;  %v840_v58 = vadd.f32 %v839_v56, %v838_v53 }
 0x120   :  { %v828_v39 = vadd.f32 %v827_v57, %v826_v55  ;;  %v841_v59 = vrot.slane %v840_v58, 2 }
 0x122   :  { %v829_v60 = vrot.slane %v828_v39, 1  ;;  %v842_v61 = vadd.f32 %v841_v59, %v840_v58  ;;  %v2616_v59 = vld [vmem:[%s3434_s2 + $0x130] sm:$0xff]  }
 0x124   :  { %v830_v62 = vadd.f32 %v829_v60, %v828_v39  ;;  %v843_v52 = vrot.slane %v842_v61, 1 }
 0x126   :  { %v831_v63 = vmul.f32 0.03125, %v830_v62  ;;  %v844_v0 = vadd.f32 %v843_v52, %v842_v61 }
 0x128   :  { %v845_v1 = vmul.f32 0.03125, %v844_v0  ;;  %v846_v2 = vmul.f32 %v831_v63, %v831_v63 }
 0x12a   :  { %v847_v3 = vsub.f32 %v845_v1, %v846_v2 }
 0x12c   :  { %v848_v4 = vadd.f32 1e-05, %v847_v3 }
 0x12e   :  { %2655 = vrsqrt.f32 %v848_v4 }
 0x13b   :  { %v2656_v9 = vpop.eup %2655 }
 0x13c   :  { %v851_v10 = vmul.f32 %v2656_v9, %v850_v7 }
 0x13e   :  { %v855_v12 = vrot.slane %v851_v10, %v3153_v8  ;;  %v861_v13 = vmul.f32 %v851_v10, %v831_v63  ;;  %v2617_v10 = vld [vmem:[%s3434_s2 + $0x128] sm:$0xff]  }
 0x140   :  { %v862_v15 = vsub.f32 %v860_v11, %v861_v13  ;;  %v859_v38 = vmul.f32 %v855_v12, %v819_v47  ;;  %v856_v37 = vmul.f32 %v855_v12, %v808_v31  ;;  %v857_v14 = vmul.f32 %v855_v12, %v811_v28 }
 0x141   :  { %v858_v17 = vmul.f32 %v855_v12, %v816_v36 }
 0x142   :  { %v867_v16 = vrot.slane %v862_v15, %v3153_v8 }
 0x144   :  { %v872_v18 = vadd.f32 %v867_v16, %v859_v38  ;;  %v869_v19 = vadd.f32 %v867_v16, %v856_v37  ;;  %v870_v20 = vadd.f32 %v867_v16, %v857_v14  ;;  %v871_v21 = vadd.f32 %v867_v16, %v858_v17 }
 0x146   :  { %v876_v22 = vmax.f32 %v872_v18, 0.0  ;;  %v873_v23 = vmax.f32 %v869_v19, 0.0  ;;  %v874_v24 = vmax.f32 %v870_v20, 0.0  ;;  %v875_v25 = vmax.f32 %v871_v21, 0.0  ;;  %v2618_v18 = vld [vmem:[%s3434_s2 + $0x120] sm:$0xff]   ;;  %v2619_v21 = vld [vmem:[%s3434_s2 + $0x118] sm:$0xff]  }
 0x148   :  { %v965_v26 = vrot.slane %v876_v22, 6  ;;  %v961_v27 = vrot.slane %v873_v23, 6  ;;  %v962_v29 = vrot.slane %v874_v24, 6  ;;  %v3160_v30 = vrot.slane %v875_v25, 6  ;;  %v2620_v22 = vld [vmem:[%s3434_s2 + $0x110] sm:$0xff]   ;;  %v2621_v23 = vld [vmem:[%s3434_s2 + $0x108] sm:$0xff]  }
 0x149   :  { %v2622_v24 = vld [vmem:[%s3434_s2 + $0x100] sm:$0xff]  }
 0x14a   :  { %v3163_v32 = vsel %vm261_vm7, %v961_v27, %v962_v29  ;;  %v973_v31 = vsel %vm261_vm7, 0.0, %v961_v27  ;;  %v975_v28 = vsel %vm261_vm7, %v962_v29, 0.0  ;;  %v3169_v33 = vsel %vm261_vm7, %v3160_v30, %v965_v26 }
 0x14b   :  { %v981_v34 = vrot.slane %v973_v31, 1  ;;  %v982_v35 = vrot.slane %v3163_v32, 1  ;;  %v984_v36 = vrot.slane %v975_v28, 1  ;;  %v1009_v40 = vrot.slane %v973_v31, 3 }
 0x14c   :  { %v1010_v41 = vrot.slane %v3163_v32, 3  ;;  %v1012_v42 = vrot.slane %v975_v28, 3  ;;  %v2189_v43 = vpack.c.bf16 %v3163_v32, %v961_v27  ;;  %v995_v44 = vrot.slane %v973_v31, 2 }
 0x14d   :  { %v983_v45 = vsel %vm187_vm1, %v981_v34, %v982_v35  ;;  %v985_v46 = vsel %vm187_vm1, %v982_v35, %v984_v36  ;;  %v996_v47 = vrot.slane %v3163_v32, 2  ;;  %v998_v48 = vrot.slane %v975_v28, 2  ;;  %v2626_v34 = vld [vmem:[%s3435_s3 + $0x70] sm:$0xff]  }
 0x14e   :  { %v1038_v50 = vpack.c.bf16 %v985_v46, %v983_v45  ;;  %v1011_v51 = vsel %vm217_vm2, %v1009_v40, %v1010_v41  ;;  %v1013_v53 = vsel %vm217_vm2, %v1010_v41, %v1012_v42  ;;  %v3187_v55 = vsel %vm261_vm7, 0.0, %v3160_v30  ;;  %v2627_v35 = vld [vmem:[%s3435_s3 + $0x30] sm:$0xff]   ;;  %v2629_v40 = vld [vmem:[%s3435_s3 + $0x68] sm:$0xff]   ;;  %v2634_v45 = vld [vmem:[%s3435_s3 + $0xa0] sm:$0xff]  }
 0x14f   :  { %v1040_v56 = vpack.c.bf16 %v1013_v53, %v1011_v51  ;;  %v997_v57 = vsel %vm202_vm4, %v995_v44, %v996_v47  ;;  %v999_v58 = vsel %vm202_vm4, %v996_v47, %v998_v48  ;;  %v3192_v39 = vsel %vm261_vm7, %v965_v26, 0.0  ;;  %v2628_v36 = vld [vmem:[%s3435_s3 + $0xb0] sm:$0xff]   ;;  %v2630_v41 = vld [vmem:[%s3435_s3 + $0x28] sm:$0xff]   ;;  %v2633_v44 = vld [vmem:[%s3435_s3 + $0x20] sm:$0xff]  }
 0x150   :  { %1319 = vmatprep.mubr.bf16.mxu0 %v1038_v50  ;;  %v1039_v60 = vpack.c.bf16 %v999_v58, %v997_v57  ;;  %v986_v61 = vrot.slane %v3187_v55, 1  ;;  %v987_v62 = vrot.slane %v3169_v33, 1  ;;  %v989_v52 = vrot.slane %v3192_v39, 1  ;;  %v2631_v42 = vld [vmem:[%s3435_s3 + $0xa8] sm:$0xff]   ;;  %v2635_v46 = vld [vmem:[%s3435_s3 + $0x58] sm:$0xff]   ;;  %v2640_v50 = vld [vmem:[%s3435_s3 + $0x90] sm:$0xff]  }
 0x151   :  { %1368 = vmatprep.mubr.bf16.mxu1 %v1040_v56  ;;  %2190 = vmatmul.mubr.msk.bf16.vlgmr.msra.gmra.mxu0 %vm3179_vm10, %v2189_v43  ;;  %v1014_v63 = vrot.slane %v3187_v55, 3  ;;  %v1015_v0 = vrot.slane %v3169_v33, 3  ;;  %v1017_v1 = vrot.slane %v3192_v39, 3  ;;  %v1000_v4 = vrot.slane %v3187_v55, 2  ;;  %v2632_v43 = vld [vmem:[%s3435_s3 + $0x60] sm:$0xff]   ;;  %v2636_v47 = vld [vmem:[%s3435_s3 + $0x18] sm:$0xff]  }
 0x152   :  { %1369 = vmatmul.mubr.bf16.vlgmr.msra.gmra.mxu1 %v1039_v60  ;;  %2464 = vmatpush3.bf16.msra.mxu0 %v3147_v54  ;;  %v988_v2 = vsel %vm187_vm1, %v986_v61, %v987_v62  ;;  %v990_v3 = vsel %vm187_vm1, %v987_v62, %v989_v52  ;;  %v1001_v5 = vrot.slane %v3169_v33, 2  ;;  %v1003_v54 = vrot.slane %v3192_v39, 2  ;;  %v2637_v48 = vld [vmem:[%s3435_s3 + $0x98] sm:$0xff]   ;;  %v2639_v51 = vld [vmem:[%s3435_s3 + $0x10] sm:$0xff]   ;;  %v2641_v53 = vld [vmem:[%s3435_s3 + $0x48] sm:$0xff]  }
 0x153   :  { %v1043_v6 = vpack.c.bf16 %v990_v3, %v988_v2  ;;  %v1016_v7 = vsel %vm217_vm2, %v1014_v63, %v1015_v0  ;;  %v1018_v9 = vsel %vm217_vm2, %v1015_v0, %v1017_v1  ;;  %2465 = vmatprep.subr.bf16.mxu0 %v2616_v59  ;;  %v1023_v12 = vrot.slane %v973_v31, 4  ;;  %v2623_v31 = vld [vmem:[%s3435_s3 + $0x78] sm:$0xff]   ;;  %v2642_v56 = vld [vmem:[%s3435_s3 + $0x8] sm:$0xff]   ;;  %v2644_v57 = vld [vmem:[%s3435_s3 + $0x40] sm:$0xff]  }
 0x154   :  { %v1045_v11 = vpack.c.bf16 %v1018_v9, %v1016_v7  ;;  %v1024_v13 = vrot.slane %v3163_v32, 4  ;;  %v1002_v15 = vsel %vm202_vm4, %v1000_v4, %v1001_v5  ;;  %v1004_v38 = vsel %vm202_vm4, %v1001_v5, %v1003_v54  ;;  %2395 = vmatprep.subr.bf16.mxu1 %v2623_v31  ;;  %v2646_v58 = vld [vmem:[%s3435_s3 + $0x80] sm:$0xff]  }
 0x155   :  { %1327 = vmatprep.mubr.bf16.mxu0 %v1043_v6  ;;  %v1026_v16 = vrot.slane %v975_v28, 4  ;;  %v2193_v14 = vpack.c.bf16 %v3169_v33, %v3160_v30  ;;  %v1044_v19 = vpack.c.bf16 %v1004_v38, %v1002_v15  ;;  %v1028_v25 = vrot.slane %v3187_v55, 4  ;;  %v2624_v28 = vld [vmem:[%s3435_s3 + $0x38] sm:$0xff]   ;;  %v2643_v55 = vld [vmem:[%s3435_s3 + $0x88] sm:$0xff]  }
 0x156   :  { %1376 = vmatprep.mubr.bf16.mxu1 %v1045_v11  ;;  %2466 = vmatpush3.bf16.msra.mxu0 %v2616_v59  ;;  %v1025_v37 = vsel %vm232_vm8, %v1023_v12, %v1024_v13  ;;  %v1029_v26 = vrot.slane %v3169_v33, 4  ;;  %v1031_v27 = vrot.slane %v3192_v39, 4  ;;  %v2625_v33 = vld [vmem:[%s3435_s3 + $0xb8] sm:$0xff]   ;;  %v2645_v39 = vld [vmem:[%s3435_s3] sm:$0xff]  }
 0x157   :  { %2467 = vmatprep.subr.bf16.mxu0 %v2617_v10  ;;  %v1027_v17 = vsel %vm232_vm8, %v1024_v13, %v1026_v16  ;;  %2396 = vmatpush3.bf16.msra.mxu1 %v2624_v28  ;;  %v3320_v59 = vld [vmem:[%s3436_s4 + $0x38] sm:$0xff]  }
 0x158   :  { %v1041_v20 = vpack.c.bf16 %v1027_v17, %v1025_v37  ;;  %v1030_v29 = vsel %vm232_vm8, %v1028_v25, %v1029_v26  ;;  %v1032_v30 = vsel %vm232_vm8, %v1029_v26, %v1031_v27  ;;  %2397 = vmatprep.subr.bf16.mxu1 %v2626_v34 }
 0x159   :  { %2194 = vmatmul.mubr.msk.bf16.gmra.mxu0 %vm3179_vm10, %v2193_v14  ;;  %v1046_v32 = vpack.c.bf16 %v1032_v30, %v1030_v29 }
 0x15a   :  { %1377 = vmatmul.mubr.bf16.gmra.mxu1 %v1044_v19  ;;  %2468 = vmatpush3.bf16.msra.mxu0 %v2617_v10 }
 0x15b   :  { %2479 = vmatprep.mubr.bf16.mxu0 %v1041_v20  ;;  %2469 = vmatprep.subr.bf16.mxu0 %v2618_v18 }
 0x15c   :  { %2398 = vmatpush3.bf16.msra.mxu1 %v2627_v35 }
 0x15d   :  { %2399 = vmatprep.subr.bf16.mxu1 %v2629_v40 }
 0x15e   :  { %2470 = vmatpush3.bf16.msra.mxu0 %v2618_v18 }
 0x15f   :  { %2471 = vmatprep.subr.bf16.mxu0 %v2619_v21 }
 0x160   :  { %2400 = vmatpush3.bf16.msra.mxu1 %v2630_v41 }
 0x161   :  { %2401 = vmatprep.subr.bf16.mxu1 %v2632_v43 }
 0x162   :  { %2472 = vmatpush3.bf16.msra.mxu0 %v2619_v21 }
 0x163   :  { %2473 = vmatprep.subr.bf16.mxu0 %v2620_v22 }
 0x164   :  { %2402 = vmatpush3.bf16.msra.mxu1 %v2633_v44 }
 0x165   :  { %2403 = vmatprep.subr.bf16.mxu1 %v2635_v46 }
 0x166   :  { %2474 = vmatpush3.bf16.msra.mxu0 %v2620_v22 }
 0x167   :  { %2475 = vmatprep.subr.bf16.mxu0 %v2621_v23 }
 0x168   :  { %2404 = vmatpush3.bf16.msra.mxu1 %v2636_v47 }
 0x169   :  { %2405 = vmatprep.subr.bf16.mxu1 %v2638_v49 }
 0x16a   :  { %2476 = vmatpush3.bf16.msra.mxu0 %v2621_v23 }
 0x16b   :  { %2477 = vmatprep.subr.bf16.mxu0 %v2622_v24 }
 0x16c   :  { %2406 = vmatpush3.bf16.msra.mxu1 %v2639_v51 }
 0x16d   :  { %2407 = vmatprep.subr.bf16.mxu1 %v2641_v53 }
 0x16e   :  { %2478 = vmatpush3.bf16.msra.mxu0 %v2622_v24 }
 0x16f   :  { %2483 = vmatprep.subr.bf16.mxu0 %v2625_v33 }
 0x170   :  { %2408 = vmatpush3.bf16.msra.mxu1 %v2642_v56 }
 0x171   :  { %2480 = vmatmul.mubr.bf16.vlgmr.msra.gmra.mxu0 %v1046_v32  ;;  %2409 = vmatprep.subr.bf16.mxu1 %v2644_v57 }
 0x172   :  { %2484 = vmatpush3.bf16.msra.mxu0 %v2625_v33 }
 0x173   :  { %2485 = vmatprep.subr.bf16.mxu0 %v2628_v36 }
 0x174   :  { %2410 = vmatpush3.bf16.msra.mxu1 %v2645_v39 }
 0x175   :  { %2503 = vmatprep.subr.bf16.mxu1 %v3320_v59 }
 0x176   :  { %2486 = vmatpush3.bf16.msra.mxu0 %v2628_v36 }
 0x177   :  { %2487 = vmatprep.subr.bf16.mxu0 %v2631_v42 }
 0x17a   :  { %2488 = vmatpush3.bf16.msra.mxu0 %v2631_v42 }
 0x17b   :  { %2489 = vmatprep.subr.bf16.mxu0 %v2634_v45 }
 0x17e   :  { %2490 = vmatpush3.bf16.msra.mxu0 %v2634_v45 }
 0x17f   :  { %2491 = vmatprep.subr.bf16.mxu0 %v2637_v48 }
 0x182   :  { %2492 = vmatpush3.bf16.msra.mxu0 %v2637_v48 }
 0x183   :  { %2493 = vmatprep.subr.bf16.mxu0 %v2640_v50 }
 0x186   :  { %2494 = vmatpush3.bf16.msra.mxu0 %v2640_v50 }
 0x187   :  { %2495 = vmatprep.subr.bf16.mxu0 %v2643_v55 }
 0x18a   :  { %2496 = vmatpush3.bf16.msra.mxu0 %v2643_v55 }
 0x18b   :  { %2497 = vmatprep.subr.bf16.mxu0 %v2646_v58 }
 0x18e   :  { %2498 = vmatpush3.bf16.msra.mxu0 %v2646_v58 }
 0x211   :  { %v2345_v60 = vpop.f32.mrf.mxu0 }
 0x212   :  { %v2373_v61 = vpop.f32.mrf.mxu1 }
 0x213   :  { %v2346_v62 = vpop.f32.mrf.mxu0 }
 0x214   :  { %v2374_v52 = vpop.f32.mrf.mxu1  ;;  %v2347_v54 = vadd.f32 %v2346_v62, %v2345_v60 }
 0x215   :  { %v2348_v63 = vpop.f32.mrf.mxu0  ;;  %v2375_v11 = vadd.f32 %v2374_v52, %v2373_v61  ;;  %v1462_v61 = vld [vmem:[%s3439_s7] sm:$0x1] }
 0x216   :  { %v2376_v0 = vpop.f32.mrf.mxu1 }
 0x217   :  { %v2349_v1 = vpop.f32.mrf.mxu0  ;;  %v1371_v19 = vadd.f32 %v2375_v11, %v2347_v54 }
 0x218   :  { %v2377_v2 = vpop.f32.mrf.mxu1  ;;  %v2350_v15 = vadd.f32 %v2349_v1, %v2348_v63  ;;  %v1472_v63 = vld [vmem:[%s3440_s8] sm:$0x1] }
 0x219   :  { %v2351_v3 = vpop.f32.mrf.mxu0  ;;  %v2378_v38 = vadd.f32 %v2377_v2, %v2376_v0 }
 0x21a   :  { %v2379_v4 = vpop.f32.mrf.mxu1 }
 0x21b   :  { %v2352_v5 = vpop.f32.mrf.mxu0  ;;  %v1374_v23 = vadd.f32 %v2378_v38, %v2350_v15 }
 0x21c   :  { %v2380_v6 = vpop.f32.mrf.mxu1  ;;  %v2353_v16 = vadd.f32 %v2352_v5, %v2351_v3 }
 0x21d   :  { %v2354_v7 = vpop.f32.mrf.mxu0  ;;  %v2381_v37 = vadd.f32 %v2380_v6, %v2379_v4 }
 0x21e   :  { %v2382_v9 = vpop.f32.mrf.mxu1 }
 0x21f   :  { %v2355_v10 = vpop.f32.mrf.mxu0  ;;  %v1379_v21 = vadd.f32 %v2381_v37, %v2353_v16 }
 0x220   :  { %v2383_v12 = vpop.f32.mrf.mxu1  ;;  %v2356_v17 = vadd.f32 %v2355_v10, %v2354_v7 }
 0x221   :  { %v2384_v18 = vadd.f32 %v2383_v12, %v2382_v9 }
 0x223   :  { %v1382_v26 = vadd.f32 %v2384_v18, %v2356_v17 }
 0x231   :  { %v2481_v13 = vpop.f32.mrf.mxu0 }
 0x232   :  { %v1428_v25 = vadd.f32 %v2481_v13, %v1379_v21 }
 0x233   :  { %v1419_v14 = vpop.f32.mrf.mxu0 }
 0x234   :  { %v1420_v22 = vadd.f32 %v1419_v14, %v1371_v19  ;;  %v1446_v28 = vmul.f32 %v1428_v25, %v1428_v25 }
 0x235   :  { %v2482_v20 = vpop.f32.mrf.mxu0 }
 0x236   :  { %v1444_v29 = vmul.f32 %v1420_v22, %v1420_v22  ;;  %v1431_v30 = vadd.f32 %v2482_v20, %v1382_v26 }
 0x237   :  { %v1422_v24 = vpop.f32.mrf.mxu0 }
 0x238   :  { %v1423_v27 = vadd.f32 %v1422_v24, %v1374_v23  ;;  %v1447_v35 = vmul.f32 %v1431_v30, %v1431_v30 }
 0x23a   :  { %v1434_v32 = vadd.f32 %v1423_v27, %v1420_v22  ;;  %v1445_v31 = vmul.f32 %v1423_v27, %v1423_v27 }
 0x23c   :  { %v1435_v33 = vadd.f32 %v1434_v32, %v1428_v25  ;;  %v1448_v34 = vadd.f32 %v1445_v31, %v1444_v29 }
 0x23e   :  { %v1436_v36 = vadd.f32 %v1435_v33, %v1431_v30  ;;  %v1449_v40 = vadd.f32 %v1448_v34, %v1446_v28 }
 0x240   :  { %v1437_v41 = vrot.slane %v1436_v36, 4  ;;  %v1450_v42 = vadd.f32 %v1449_v40, %v1447_v35 }
 0x242   :  { %v1438_v43 = vadd.f32 %v1437_v41, %v1436_v36  ;;  %v1451_v44 = vrot.slane %v1450_v42, 4 }
 0x244   :  { %v1439_v45 = vrot.slane %v1438_v43, 2  ;;  %v1452_v46 = vadd.f32 %v1451_v44, %v1450_v42 }
 0x246   :  { %v1440_v47 = vadd.f32 %v1439_v45, %v1438_v43  ;;  %v1453_v48 = vrot.slane %v1452_v46, 2 }
 0x248   :  { %v1441_v49 = vrot.slane %v1440_v47, 1  ;;  %v1454_v50 = vadd.f32 %v1453_v48, %v1452_v46  ;;  %v2648_v46 = vld [vmem:[%s3436_s4 + $0x30] sm:$0xff]  }
 0x24a   :  { %v1442_v51 = vadd.f32 %v1441_v49, %v1440_v47  ;;  %v1455_v53 = vrot.slane %v1454_v50, 1 }
 0x24c   :  { %v1443_v55 = vmul.f32 0.03125, %v1442_v51  ;;  %v1456_v56 = vadd.f32 %v1455_v53, %v1454_v50 }
 0x24e   :  { %v1457_v57 = vmul.f32 0.03125, %v1456_v56  ;;  %v1458_v58 = vmul.f32 %v1443_v55, %v1443_v55  ;;  %v2649_v56 = vld [vmem:[%s3436_s4 + $0x28] sm:$0xff]  }
 0x250   :  { %v1459_v39 = vsub.f32 %v1457_v57, %v1458_v58  ;;  %v2663_v57 = vld [vmem:[%s3432_s0] sm:$0xff]  ;;  %v2664_v58 = vld [vmem:[%s3432_s0 + $0x8] sm:$0xff] }
 0x252   :  { %v1460_v60 = vadd.f32 1e-05, %v1459_v39 }
 0x254   :  { %2657 = vrsqrt.f32 %v1460_v60  ;;  %v2650_v60 = vld [vmem:[%s3436_s4 + $0x20] sm:$0xff]  }
 0x261   :  { %v2658_v62 = vpop.eup %2657 }
 0x262   :  { %v1463_v52 = vmul.f32 %v2658_v62, %v1462_v61  ;;  %v2651_v61 = vld [vmem:[%s3436_s4 + $0x18] sm:$0xff]   ;;  %v2652_v62 = vld [vmem:[%s3436_s4 + $0x10] sm:$0xff]  }
 0x264   :  { %v1467_v0 = vrot.slane %v1463_v52, %v3153_v8  ;;  %v1473_v1 = vmul.f32 %v1463_v52, %v1443_v55  ;;  %v2653_v52 = vld [vmem:[%s3436_s4 + $0x8] sm:$0xff]  }
 0x266   :  { %v1474_v2 = vsub.f32 %v1472_v63, %v1473_v1  ;;  %v1469_v3 = vmul.f32 %v1467_v0, %v1423_v27  ;;  %v1470_v4 = vmul.f32 %v1467_v0, %v1428_v25  ;;  %v1468_v6 = vmul.f32 %v1467_v0, %v1420_v22  ;;  %v2654_v63 = vld [vmem:[%s3436_s4] sm:$0xff]   ;;  %v2666_v1 = vld [vmem:[%s3432_s0 + $0x18] sm:$0xff] }
 0x267   :  { %v1471_v7 = vmul.f32 %v1467_v0, %v1431_v30  ;;  %v2665_v0 = vld [vmem:[%s3432_s0 + $0x10] sm:$0xff] }
 0x268   :  { %v1479_v5 = vrot.slane %v1474_v2, %v3153_v8  ;;  %v1890_v2 = vpack.c.bf16 %v2666_v1, %v2665_v0 }
 0x26a   :  { %v1482_v9 = vadd.f32 %v1479_v5, %v1469_v3  ;;  %v1481_v10 = vadd.f32 %v1479_v5, %v1468_v6  ;;  %v1483_v54 = vadd.f32 %v1479_v5, %v1470_v4  ;;  %v1484_v11 = vadd.f32 %v1479_v5, %v1471_v7 }
 0x26c   :  { %v1486_v12 = vmax.f32 %v1482_v9, 0.0  ;;  %v1485_v13 = vmax.f32 %v1481_v10, 0.0  ;;  %v1487_v15 = vmax.f32 %v1483_v54, 0.0  ;;  %v1488_v38 = vmax.f32 %v1484_v11, 0.0 }
 0x26e   :  { %v1543_v16 = vrot.slane %v1486_v12, 7  ;;  %v1542_v37 = vrot.slane %v1485_v13, 7  ;;  %v1545_v14 = vrot.slane %v1487_v15, 7  ;;  %v1546_v17 = vrot.slane %v1488_v38, 7 }
 0x270   :  { %v1556_v18 = vsel %vm1541_vm11, %v1543_v16, 0.0  ;;  %v1544_v19 = vsel %vm1541_vm11, %v1542_v37, %v1543_v16  ;;  %v1554_v20 = vsel %vm1541_vm11, 0.0, %v1542_v37  ;;  %v1547_v21 = vsel %vm1541_vm11, %v1545_v14, %v1546_v17 }
 0x271   :  { %v1562_v22 = vrot.slane %v1554_v20, 1  ;;  %v1563_v23 = vrot.slane %v1544_v19, 1  ;;  %v1565_v24 = vrot.slane %v1556_v18, 1  ;;  %v2221_v25 = vpack.c.bf16 %v1544_v19, %v1542_v37 }
 0x272   :  { %v1576_v26 = vrot.slane %v1554_v20, 2  ;;  %v1577_v27 = vrot.slane %v1544_v19, 2  ;;  %v1579_v29 = vrot.slane %v1556_v18, 2  ;;  %v1555_v30 = vsel %vm1541_vm11, 0.0, %v1545_v14 }
 0x273   :  { %v1564_v32 = vsel %vm187_vm1, %v1562_v22, %v1563_v23  ;;  %v1566_v31 = vsel %vm187_vm1, %v1563_v23, %v1565_v24  ;;  %v1557_v28 = vsel %vm1541_vm11, %v1546_v17, 0.0  ;;  %v1581_v33 = vrot.slane %v1555_v30, 2 }
 0x274   :  { %v1591_v35 = vpack.c.bf16 %v1566_v31, %v1564_v32  ;;  %v1578_v36 = vsel %vm202_vm4, %v1576_v26, %v1577_v27  ;;  %v1580_v40 = vsel %vm202_vm4, %v1577_v27, %v1579_v29  ;;  %v1582_v41 = vrot.slane %v1547_v21, 2 }
 0x275   :  { %v1592_v42 = vpack.c.bf16 %v1580_v40, %v1578_v36  ;;  %v1584_v43 = vrot.slane %v1557_v28, 2  ;;  %v1567_v44 = vrot.slane %v1555_v30, 1  ;;  %v1568_v45 = vrot.slane %v1547_v21, 1 }
 0x276   :  { %1772 = vmatprep.mubr.bf16.mxu1 %v1591_v35  ;;  %v1583_v47 = vsel %vm202_vm4, %v1581_v33, %v1582_v41  ;;  %v1570_v48 = vrot.slane %v1557_v28, 1  ;;  %v2225_v39 = vpack.c.bf16 %v1547_v21, %v1545_v14 }
 0x277   :  { %2499 = vmatprep.mubr.bf16.mxu0 %v1592_v42  ;;  %2222 = vmatmul.mubr.msk.bf16.vlgmr.msra.gmra.mxu1 %vm3341_vm13, %v2221_v25  ;;  %v1585_v49 = vsel %vm202_vm4, %v1582_v41, %v1584_v43  ;;  %v1569_v50 = vsel %vm187_vm1, %v1567_v44, %v1568_v45 }
 0x278   :  { %v1595_v51 = vpack.c.bf16 %v1585_v49, %v1583_v47  ;;  %2504 = vmatpush3.bf16.msra.mxu1 %v3320_v59  ;;  %v1571_v53 = vsel %vm187_vm1, %v1568_v45, %v1570_v48  ;;  %v1889_v59 = vpack.c.bf16 %v2664_v58, %v2663_v57 }
 0x279   :  { %v1594_v55 = vpack.c.bf16 %v1571_v53, %v1569_v50  ;;  %2505 = vmatprep.subr.bf16.mxu1 %v2648_v46 }
 0x27a   :  { %2500 = vmatmul.mubr.bf16.vlgmr.msra.gmra.mxu0 %v1595_v51 }
 0x27b   :  { %1780 = vmatprep.mubr.bf16.mxu1 %v1594_v55 }
 0x27c   :  { %2506 = vmatpush3.bf16.msra.mxu1 %v2648_v46 }
 0x27d   :  { %2507 = vmatprep.subr.bf16.mxu1 %v2649_v56 }
 0x27f   :  { %2226 = vmatmul.mubr.msk.bf16.gmra.mxu1 %vm3341_vm13, %v2225_v39 }
 0x280   :  { %2508 = vmatpush3.bf16.msra.mxu1 %v2649_v56  ;;  %2519 = vmatprep.mubr.bf16.mxu1 %v1889_v59 }
 0x281   :  { %2509 = vmatprep.subr.bf16.mxu1 %v2650_v60 }
 0x284   :  { %2510 = vmatpush3.bf16.msra.mxu1 %v2650_v60 }
 0x285   :  { %2511 = vmatprep.subr.bf16.mxu1 %v2651_v61 }
 0x288   :  { %2512 = vmatpush3.bf16.msra.mxu1 %v2651_v61 }
 0x289   :  { %2513 = vmatprep.subr.bf16.mxu1 %v2652_v62 }
 0x28c   :  { %2514 = vmatpush3.bf16.msra.mxu1 %v2652_v62 }
 0x28d   :  { %2515 = vmatprep.subr.bf16.mxu1 %v2653_v52 }
 0x290   :  { %2516 = vmatpush3.bf16.msra.mxu1 %v2653_v52 }
 0x291   :  { %2517 = vmatprep.subr.bf16.mxu1 %v2654_v63 }
 0x294   :  { %2518 = vmatpush3.bf16.msra.mxu1 %v2654_v63 }
 0x297   :  { %2520 = vmatmul.mubr.bf16.vlgmr.msra.gmra.mxu1 %v1890_v2 }
 0x337   :  { %v2411_v3 = vpop.f32.mrf.mxu1 }
 0x339   :  { %v2412_v4 = vpop.f32.mrf.mxu1 }
 0x33a   :  { %v2501_v5 = vpop.f32.mrf.mxu0  ;;  %v2413_v10 = vadd.f32 %v2412_v4, %v2411_v3 }
 0x33b   :  { %v2414_v6 = vpop.f32.mrf.mxu1 }
 0x33c   :  { %v1823_v7 = vpop.f32.mrf.mxu0 }
 0x33d   :  { %v2415_v9 = vpop.f32.mrf.mxu1  ;;  %v3391_v16 = vadd.f32 %v2413_v10, %v1823_v7 }
 0x33e   :  { %v2502_v54 = vpop.f32.mrf.mxu0  ;;  %v2416_v11 = vadd.f32 %v2415_v9, %v2414_v6 }
 0x33f   :  { %v2417_v12 = vpop.f32.mrf.mxu1  ;;  %v1848_v20 = vmul.f32 %v3391_v16, %v3391_v16 }
 0x340   :  { %v1826_v13 = vpop.f32.mrf.mxu0 }
 0x341   :  { %v3389_v15 = vadd.f32 %v2416_v11, %v1826_v13  ;;  %v2418_v38 = vpop.f32.mrf.mxu1 }
 0x342   :  { %v2419_v37 = vadd.f32 %v2418_v38, %v2417_v12 }
 0x343   :  { %v2420_v14 = vpop.f32.mrf.mxu1  ;;  %v1849_v17 = vmul.f32 %v3389_v15, %v3389_v15  ;;  %v1838_v21 = vadd.f32 %v3389_v15, %v3391_v16 }
 0x344   :  { %v3395_v18 = vadd.f32 %v2501_v5, %v2419_v37 }
 0x345   :  { %v2421_v19 = vpop.f32.mrf.mxu1  ;;  %v1852_v24 = vadd.f32 %v1849_v17, %v1848_v20  ;;  %v1866_v20 = vld [vmem:[%s3441_s9] sm:$0x1]  ;;  %s2690_s9 = smov [#allocation2]  }
 0x346   :  { %v1850_v22 = vmul.f32 %v3395_v18, %v3395_v18  ;;  %v2422_v23 = vadd.f32 %v2421_v19, %v2420_v14  ;;  %v1839_v25 = vadd.f32 %v1838_v21, %v3395_v18 }
 0x348   :  { %v3404_v26 = vadd.f32 %v2502_v54, %v2422_v23  ;;  %v1853_v27 = vadd.f32 %v1852_v24, %v1850_v22  ;;  %v1876_v23 = vld [vmem:[%s3442_s10] sm:$0x1]  ;;  %s2072_s10 = sshll.u32 %s2690_s9, 4  ;;  %s2073_s10 = int_to_ptr.vmem [resolvable:$true] %s2072_s10 }
 0x349   :  { %v2032_v24 = vld [vmem:[%s3443_s11] sm:$0x1]  ;;  %s2667_s11 = scalar_lea.vmem %s2073_s10, 512  ;;  %p2672_p1 = scmp.lt.s32.totalorder %s2073_s10, %s2073_s10 }
 0x34a   :  { %v1840_v29 = vadd.f32 %v1839_v25, %v3404_v26  ;;  %v1851_v30 = vmul.f32 %v3404_v26, %v3404_v26  ;;  %p2668_p0 = scmp.ne.s32.totalorder %s2073_s10, %s2667_s11  ;;  %p2673_p2 = scmp.lt.s32.totalorder %s2667_s11, %s2667_s11 }
 0x34c   :  { %v1841_v32 = vrot.slane %v1840_v29, 4  ;;  %v1854_v31 = vadd.f32 %v1853_v27, %v1851_v30  ;;  %p2674_p3 = por %p2673_p2, %p2672_p1 }
 0x34e   :  { %v1842_v28 = vadd.f32 %v1841_v32, %v1840_v29  ;;  %v1855_v33 = vrot.slane %v1854_v31, 4  ;;  %p2675_p4 = pnand %p2674_p3, %p2668_p0 }
 0x350   :  { %v1843_v34 = vrot.slane %v1842_v28, 2  ;;  %v1856_v35 = vadd.f32 %v1855_v33, %v1854_v31  ;;  %v2042_v31 = vld [vmem:[%s3444_s12] sm:$0x1] }
 0x352   :  { %v1844_v36 = vadd.f32 %v1843_v34, %v1842_v28  ;;  %v1857_v40 = vrot.slane %v1856_v35, 2 }
 0x354   :  { %v1845_v41 = vrot.slane %v1844_v36, 1  ;;  %v1858_v42 = vadd.f32 %v1857_v40, %v1856_v35 }
 0x356   :  { %v1846_v45 = vadd.f32 %v1845_v41, %v1844_v36  ;;  %v1859_v46 = vrot.slane %v1858_v42, 1 }
 0x357   :  { %v2521_v43 = vpop.f32.mrf.mxu1 }
 0x358   :  { %v1847_v53 = vmul.f32 0.03125, %v1846_v45  ;;  %v1860_v55 = vadd.f32 %v1859_v46, %v1858_v42  ;;  %v2016_v56 = vmul.f32 %v2521_v43, %v2521_v43 }
 0x359   :  { %v1989_v44 = vpop.f32.mrf.mxu1 }
 0x35a   :  { %v2014_v49 = vmul.f32 %v1989_v44, %v1989_v44  ;;  %v1861_v61 = vmul.f32 0.03125, %v1860_v55  ;;  %v1862_v62 = vmul.f32 %v1847_v53, %v1847_v53 }
 0x35b   :  { %v2522_v47 = vpop.f32.mrf.mxu1 }
 0x35c   :  { %v2017_v59 = vmul.f32 %v2522_v47, %v2522_v47  ;;  %v1863_v2 = vsub.f32 %v1861_v61, %v1862_v62 }
 0x35d   :  { %v1992_v48 = vpop.f32.mrf.mxu1 }
 0x35e   :  { %v2004_v50 = vadd.f32 %v1992_v48, %v1989_v44  ;;  %v2015_v51 = vmul.f32 %v1992_v48, %v1992_v48  ;;  %v1864_v7 = vadd.f32 1e-05, %v1863_v2 }
 0x360   :  { %v2005_v57 = vadd.f32 %v2521_v43, %v2004_v50  ;;  %v2018_v58 = vadd.f32 %v2015_v51, %v2014_v49  ;;  %2659 = vrsqrt.f32 %v1864_v7 }
 0x362   :  { %v2006_v39 = vadd.f32 %v2522_v47, %v2005_v57  ;;  %v2019_v60 = vadd.f32 %v2018_v58, %v2016_v56 }
 0x364   :  { %v2007_v52 = vrot.slane %v2006_v39, 4  ;;  %v2020_v63 = vadd.f32 %v2019_v60, %v2017_v59 }
 0x366   :  { %v2008_v0 = vadd.f32 %v2007_v52, %v2006_v39  ;;  %v2021_v1 = vrot.slane %v2020_v63, 4 }
 0x368   :  { %v2009_v3 = vrot.slane %v2008_v0, 2  ;;  %v2022_v4 = vadd.f32 %v2021_v1, %v2020_v63 }
 0x36a   :  { %v2010_v5 = vadd.f32 %v2009_v3, %v2008_v0  ;;  %v2023_v6 = vrot.slane %v2022_v4, 2 }
 0x36c   :  { %v2011_v9 = vrot.slane %v2010_v5, 1  ;;  %v2024_v10 = vadd.f32 %v2023_v6, %v2022_v4 }
 0x36d   :  { %v2660_v19 = vpop.eup %2659 }
 0x36e   :  { %v2012_v54 = vadd.f32 %v2011_v9, %v2010_v5  ;;  %v2025_v11 = vrot.slane %v2024_v10, 1  ;;  %v1867_v21 = vmul.f32 %v2660_v19, %v1866_v20 }
 0x370   :  { %v2013_v12 = vmul.f32 0.03125, %v2012_v54  ;;  %v2026_v13 = vadd.f32 %v2025_v11, %v2024_v10  ;;  %v1877_v22 = vmul.f32 %v1867_v21, %v1847_v53  ;;  %v1871_v30 = vrot.slane %v1867_v21, %v3153_v8 }
 0x372   :  { %v2027_v38 = vmul.f32 0.03125, %v2026_v13  ;;  %v2028_v37 = vmul.f32 %v2013_v12, %v2013_v12  ;;  %v1878_v27 = vsub.f32 %v1876_v23, %v1877_v22  ;;  %v1875_v34 = vmul.f32 %v1871_v30, %v3404_v26 }
 0x373   :  { %v1873_v36 = vmul.f32 %v1871_v30, %v3389_v15  ;;  %v1872_v41 = vmul.f32 %v1871_v30, %v3391_v16  ;;  %v1874_v42 = vmul.f32 %v1871_v30, %v3395_v18 }
 0x374   :  { %v2029_v14 = vsub.f32 %v2027_v38, %v2028_v37  ;;  %v1883_v33 = vrot.slane %v1878_v27, %v3153_v8 }
 0x376   :  { %v2030_v17 = vadd.f32 1e-05, %v2029_v14  ;;  %v1888_v51 = vadd.f32 %v1883_v33, %v1875_v34  ;;  %v1886_v53 = vadd.f32 %v1883_v33, %v1873_v36  ;;  %v1885_v55 = vadd.f32 %v1883_v33, %v1872_v41 }
 0x377   :  { %v1887_v56 = vadd.f32 %v1883_v33, %v1874_v42 }
 0x378   :  { %2661 = vrsqrt.f32 %v2030_v17 }
 0x385   :  { %v2662_v25 = vpop.eup %2661 }
 0x386   :  { %v2033_v29 = vmul.f32 %v2662_v25, %v2032_v24 }
 0x388   :  { %v2037_v32 = vrot.slane %v2033_v29, %v3153_v8  ;;  %v2043_v28 = vmul.f32 %v2033_v29, %v2013_v12 }
 0x38a   :  { %v2044_v35 = vsub.f32 %v2042_v31, %v2043_v28  ;;  %v2038_v40 = vmul.f32 %v2037_v32, %v1989_v44  ;;  %v2039_v45 = vmul.f32 %v2037_v32, %v1992_v48  ;;  %v2040_v46 = vmul.f32 %v2521_v43, %v2037_v32 }
 0x38b   :  { %v2041_v49 = vmul.f32 %v2522_v47, %v2037_v32 }
 0x38c   :  { %v2049_v50 = vrot.slane %v2044_v35, %v3153_v8 }
 0x38e   :  { %v2052_v57 = vadd.f32 %v2049_v50, %v2039_v45  ;;  %v2051_v58 = vadd.f32 %v2049_v50, %v2038_v40  ;;  %v2053_v26 = vadd.f32 %v2049_v50, %v2040_v46  ;;  %v2054_v59 = vadd.f32 %v2049_v50, %v2041_v49 }
 0x390   :  { %v2056_v15 = vadd.f32 %v2052_v57, %v1886_v53  ;;  %v2055_v44 = vadd.f32 %v2051_v58, %v1885_v55  ;;  %v2057_v16 = vadd.f32 %v2053_v26, %v1887_v56  ;;  %v2058_v39 = vadd.f32 %v2054_v59, %v1888_v51 }
 0x392   :  { %v2060_v18 = vmax.f32 %v2056_v15, 0.0  ;;  %v2059_v48 = vmax.f32 %v2055_v44, 0.0  ;;  %v2061_v43 = vmax.f32 %v2057_v16, 0.0  ;;  %v2062_v47 = vmax.f32 %v2058_v39, 0.0 }
 0x394   :  { %2064 = vst [vmem:[#allocation2 + $0x8] sm:$0xff] %v2060_v18  ;;  %2063 = vst [vmem:[#allocation2] sm:$0xff] %v2059_v48 }
 0x395   :  { %2065 = vst [vmem:[#allocation2 + $0x10] sm:$0xff] %v2061_v43  ;;  %2066 = vst [vmem:[#allocation2 + $0x18] sm:$0xff] %v2062_v47 }
 0x396   :  { %2678 = shalt.err (!%p2675_p4)
}
 0x397   :  { %s2691_s12 = smov 128   ;;  %s2692_s27 = smov 8  }
 0x398   :  { %2078 = dma.vmem_to_hbm [thread:$0]  %s2073_s10, 512, %s3445_s13, [#allocation3], %s2691_s12, %s2691_s12, %s2692_s27  }
 0x399   :  { %2687 = dma.done.wait [#allocation3], 512  }
 0x39a   :  { %2688 = vsyncadd [#allocation3], 4294966784 }
 0x39b   :  { %2082 = vsyncpa [#allocation3], 1 }

</bundles_post_ra>
